<compile_context>
chip_gen: v7x
topology: tpu7x:2x2x1
jax: 0.10.0
libtpu: 0.0.40
codegen_flags: <defaults>
</compile_context>

<pallas_src>
import functools

import jax
import jax.numpy as jnp
from jax.experimental import pallas as pl
from jax.experimental.pallas import tpu as pltpu

_LANE = 128


def _round_up(n, m):
    return ((n + m - 1) // m) * m


# ---------------------------------------------------------------------------
# Kernel
# ---------------------------------------------------------------------------
def _mlp_kernel(x_ref,
                w1_ref, b1_ref, w2_ref, b2_ref, w3_ref, b3_ref,
                w4_ref, b4_ref, w5_ref, b5_ref,
                o_ref):
    """One batch tile: cast -> 4x (Linear -> ReLU) -> final Linear.

    Eval-mode BatchNorm1d is pre-folded into the following Linear's weight and
    bias; eval-mode Dropout is the identity. The input cast runs on the VPU
    inside the kernel. Matmuls run in the weight dtype (bf16 in deployment)
    with f32 accumulation; biases stay f32.
    """
    h = x_ref[...].astype(w1_ref.dtype)
    for w_ref, b_ref in ((w1_ref, b1_ref), (w2_ref, b2_ref),
                         (w3_ref, b3_ref), (w4_ref, b4_ref)):
        acc = jnp.dot(h, w_ref[...], preferred_element_type=jnp.float32)
        h = jnp.maximum(acc + b_ref[...], 0.0).astype(w_ref.dtype)
    logits = jnp.dot(h, w5_ref[...], preferred_element_type=jnp.float32) + b5_ref[...]
    o_ref[...] = logits.astype(o_ref.dtype)


# ---------------------------------------------------------------------------
# Wrapper helpers
# ---------------------------------------------------------------------------
def _physical_vmem_bytes(default=64 * 1024 * 1024):
    """Physical VMEM; conservative v7x default if the query is unavailable."""
    try:
        info = pltpu.get_tpu_info()
        return int(getattr(info, "vmem_capacity_bytes", default))
    except Exception:
        return default


def _resident_spec(p):
    """VMEM-resident operand (constant index_map). Single-buffered when the
    installed jax supports pipeline_mode; returns (spec, buffer_count)."""
    index_map = lambda i: (0, 0)
    try:
        return pl.BlockSpec(p.shape, index_map, pipeline_mode=pl.Buffered(1)), 1
    except TypeError:  # older jax: no pipeline_mode kwarg -> default 2 buffers
        return pl.BlockSpec(p.shape, index_map), 2


def _pick_batch_tile(B, block_b):
    """16-aligned batch tile (bf16 sublane packing). Medium batches are split
    into >=2 grid steps so the parallel axis can use both v7x TensorCores."""
    tb = min(block_b, _round_up(B, 16))
    if _round_up(B, tb) // tb == 1 and B >= 32:
        tb = _round_up((B + 1) // 2, 16)
    return tb, _round_up(B, tb)


# ---------------------------------------------------------------------------
# Wrapper
# ---------------------------------------------------------------------------
@functools.partial(jax.jit, static_argnames=("num_classes", "block_b"))
def genre_classifier_forward(x, packed_params, *, num_classes, block_b=512):
    """x: [B, input_size] (any float dtype; cast happens in-kernel).

    packed_params from fold_and_pack_params(): weights [in, out] (input_size,
    the 64-wide hidden layer and the classifier columns zero-padded to
    multiples of 128), biases [1, out] f32. Returns [B, num_classes] f32.
    """
    (w1, b1, w2, b2, w3, b3, w4, b4, w5, b5) = packed_params
    B, F_in = x.shape
    F = w1.shape[0]          # input_size, padded to a multiple of 128
    c_pad = w5.shape[-1]     # num_classes, padded to a multiple of 128

    tb, b_pad = _pick_batch_tile(B, block_b)

    # x keeps its HBM dtype; only pad when the batch is ragged w.r.t. the tile
    # or input_size was padded at param-prep time.
    x_p = x
    if b_pad != B or F != F_in:
        x_p = jnp.pad(x, ((0, b_pad - B), (0, F - F_in)))

    grid = (b_pad // tb,)

    resident = [_resident_spec(p) for p in packed_params]
    in_specs = [pl.BlockSpec((tb, F), lambda i: (i, 0))] + [s for s, _ in resident]
    out_spec = pl.BlockSpec((tb, c_pad), lambda i: (i, 0))

    # VMEM budget: resident weights (x buffer count) + double-buffered x/out
    # tiles + activation headroom; cap at 3/4 of physical VMEM (64 MiB on v7x).
    weight_bytes = sum(p.size * p.dtype.itemsize * n
                       for p, (_, n) in zip(packed_params, resident))
    tile_bytes = 2 * tb * F * x_p.dtype.itemsize + 2 * tb * c_pad * 4
    act_bytes = 6 * tb * 512 * 4
    need = weight_bytes + tile_bytes + act_bytes + (4 << 20)
    vmem_limit = min(max(need, 32 << 20), int(0.75 * _physical_vmem_bytes()))

    dims = [F, w1.shape[1], w2.shape[1], w3.shape[1], w4.shape[1], c_pad]
    flops = 2 * b_pad * sum(dims[i] * dims[i + 1] for i in range(5))
    bytes_accessed = (x_p.size * x_p.dtype.itemsize
                      + sum(p.size * p.dtype.itemsize for p in packed_params)
                      + b_pad * c_pad * 4)

    out = pl.pallas_call(
        _mlp_kernel,
        out_shape=jax.ShapeDtypeStruct((b_pad, c_pad), jnp.float32),
        grid_spec=pltpu.PrefetchScalarGridSpec(
            num_scalar_prefetch=0,
            grid=grid,
            in_specs=in_specs,
            out_specs=out_spec,
        ),
        compiler_params=pltpu.CompilerParams(
            dimension_semantics=("parallel",),
            vmem_limit_bytes=vmem_limit,
        ),
        cost_estimate=pl.CostEstimate(
            flops=flops, transcendentals=0, bytes_accessed=bytes_accessed),
    )(x_p, *packed_params)

    return out[:B, :num_classes]


# ---------------------------------------------------------------------------
# Parameters: synthetic init, BN folding, lane padding, packing
# ---------------------------------------------------------------------------
def init_raw_params(key, input_size, num_classes):
    """Deterministic synthetic params matching GenreClassifier shapes.

    Linear weights are stored [in, out] (transpose of PyTorch's [out, in]).
    Returns (blocks, (w5, b5)); each block is
    (w, b, gamma, beta, running_mean, running_var) for Linear+ReLU+BN+Dropout.
    """
    dims = [input_size, 512, 256, 128, 64, num_classes]
    keys = jax.random.split(key, 6 * 4 + 2)
    ki = 0
    blocks = []
    for li in range(4):
        fan_in, fan_out = dims[li], dims[li + 1]
        w = jax.random.normal(keys[ki], (fan_in, fan_out), jnp.float32) / jnp.sqrt(fan_in); ki += 1
        b = 0.01 * jax.random.normal(keys[ki], (1, fan_out), jnp.float32); ki += 1
        gamma = 1.0 + 0.1 * jax.random.normal(keys[ki], (1, fan_out), jnp.float32); ki += 1
        beta = 0.1 * jax.random.normal(keys[ki], (1, fan_out), jnp.float32); ki += 1
        mean = 0.05 * jax.random.normal(keys[ki], (1, fan_out), jnp.float32); ki += 1
        var = 1.0 + 0.1 * jax.random.uniform(keys[ki], (1, fan_out), jnp.float32); ki += 1
        blocks.append((w, b, gamma, beta, mean, var))
    w5 = jax.random.normal(keys[ki], (dims[4], dims[5]), jnp.float32) / jnp.sqrt(dims[4]); ki += 1
    b5 = 0.01 * jax.random.normal(keys[ki], (1, dims[5]), jnp.float32); ki += 1
    return blocks, (w5, b5)


def fold_and_pack_params(raw, *, weight_dtype=jnp.bfloat16, eps=1e-5, lane=_LANE):
    """Fold each block's eval-mode BN (which sits after the ReLU) into the NEXT
    Linear:  (relu_out * s + t) @ W + b == relu_out @ (diag(s) W) + (b + t @ W)
    with s = gamma / sqrt(var + eps), t = beta - mean * s.

    Then zero-pads to lane-dense shapes: input_size (w1 rows), any hidden width
    not a multiple of 128 (w_i cols + b_i and w_{i+1} rows -- exact, since
    relu(0@W + 0) = 0 contributes nothing downstream), and the classifier
    columns (wrapper slices back to num_classes). Weights cast to
    `weight_dtype`; biases stay float32. Returns flat tuple (w1, b1, ..., w5, b5).

    NOTE: casting to bf16 after folding widens weight dynamic range (scaled by
    gamma/sqrt(var)); keep weight_dtype=float32 if gamma/var are extreme.
    """
    blocks, (w5, b5) = raw
    ws = [blk[0] for blk in blocks] + [w5]
    bs = [blk[1] for blk in blocks] + [b5]

    for li, (_, _, gamma, beta, mean, var) in enumerate(blocks):
        s = gamma / jnp.sqrt(var + eps)      # [1, out_li]
        t = beta - mean * s                  # [1, out_li]
        w_next = ws[li + 1]                  # original [out_li, next_out]
        bs[li + 1] = bs[li + 1] + t @ w_next
        ws[li + 1] = w_next * s.T            # row-scale by s

    # Lane-dense padding (all exact).
    f_pad = _round_up(ws[0].shape[0], lane)
    if f_pad != ws[0].shape[0]:
        ws[0] = jnp.pad(ws[0], ((0, f_pad - ws[0].shape[0]), (0, 0)))
    for li in range(len(ws) - 1):            # hidden widths (e.g. 64 -> 128)
        out_dim = ws[li].shape[1]
        out_pad = _round_up(out_dim, lane)
        if out_pad != out_dim:
            ws[li] = jnp.pad(ws[li], ((0, 0), (0, out_pad - out_dim)))
            bs[li] = jnp.pad(bs[li], ((0, 0), (0, out_pad - out_dim)))
            ws[li + 1] = jnp.pad(ws[li + 1], ((0, out_pad - out_dim), (0, 0)))
    num_classes = ws[-1].shape[-1]           # classifier columns
    c_pad = _round_up(num_classes, lane)
    if c_pad != num_classes:
        ws[-1] = jnp.pad(ws[-1], ((0, 0), (0, c_pad - num_classes)))
        bs[-1] = jnp.pad(bs[-1], ((0, 0), (0, c_pad - num_classes)))

    packed = []
    for w, b in zip(ws, bs):
        packed += [w.astype(weight_dtype), b.astype(jnp.float32)]
    return tuple(packed)


# ---------------------------------------------------------------------------
# Plain-JAX references
# ---------------------------------------------------------------------------
def reference_forward(x, raw, eps=1e-5):
    """f32 reference of the original eval-mode forward:
    (Linear -> ReLU -> BatchNorm1d(running stats) -> Dropout=id) x4 -> Linear."""
    blocks, (w5, b5) = raw
    h = x.astype(jnp.float32)
    for (w, b, gamma, beta, mean, var) in blocks:
        h = jnp.maximum(h @ w + b, 0.0)
        h = (h - mean) / jnp.sqrt(var + eps) * gamma + beta
    return h @ w5 + b5


def reference_forward_packed(x, packed, num_classes):
    """Plain-JAX forward with folded/packed (lane-padded) params mimicking
    kernel precision (weight-dtype matmul inputs, f32 accumulation, f32 biases)."""
    (w1, b1, w2, b2, w3, b3, w4, b4, w5, b5) = packed
    F = w1.shape[0]
    if x.shape[1] != F:
        x = jnp.pad(x, ((0, 0), (0, F - x.shape[1])))
    h = x.astype(w1.dtype)
    for w, b in ((w1, b1), (w2, b2), (w3, b3), (w4, b4)):
        acc = jnp.dot(h, w, preferred_element_type=jnp.float32)
        h = jnp.maximum(acc + b, 0.0).astype(w.dtype)
    logits = jnp.dot(h, w5, preferred_element_type=jnp.float32) + b5
    return logits[:, :num_classes]


# ---------------------------------------------------------------------------
# Self-test
# ---------------------------------------------------------------------------
if __name__ == "__main__":
    key = jax.random.PRNGKey(0)
    k_x, k_p = jax.random.split(key)

    batch = 32          # >= 32 -> exercises the 2-grid-step (megacore) split
    input_size = 128
    num_classes = 10

    x = jax.random.normal(k_x, (batch, input_size), jnp.float32)
    raw = init_raw_params(k_p, input_size, num_classes)
    ref_unfolded = reference_forward(x, raw)

    # 1) Validate the BN-fold + lane-padding algebra in pure f32 JAX.
    packed_f32 = fold_and_pack_params(raw, weight_dtype=jnp.float32)
    ref_folded = reference_forward_packed(x, packed_f32, num_classes)
    assert jnp.allclose(ref_folded, ref_unfolded, atol=1e-3, rtol=1e-3), "BN fold mismatch"

    # 2) Pallas kernel with f32 params vs the original (unfolded) reference.
    out_f32 = genre_classifier_forward(x, packed_f32, num_classes=num_classes)
    out_f32 = jax.block_until_ready(out_f32)
    assert out_f32.shape == (batch, num_classes)
    assert jnp.allclose(out_f32, ref_unfolded, atol=1e-3, rtol=1e-3), "f32 kernel mismatch"

    # 3) Deployment config: bf16 weights/activations, f32 accumulate. Compare
    #    against a plain-JAX forward using the exact same bf16 params.
    packed_bf16 = fold_and_pack_params(raw, weight_dtype=jnp.bfloat16)
    out_bf16 = genre_classifier_forward(x, packed_bf16, num_classes=num_classes)
    out_bf16 = jax.block_until_ready(out_bf16)
    ref_bf16 = reference_forward_packed(x, packed_bf16, num_classes)
    assert out_bf16.shape == (batch, num_classes)
    assert jnp.allclose(out_bf16, ref_bf16, atol=2e-2, rtol=2e-2), "bf16 kernel mismatch"

    # 4) Ragged batch (exercises the wrapper batch-pad path).
    x_odd = x[:20]
    out_odd = genre_classifier_forward(x_odd, packed_bf16, num_classes=num_classes)
    out_odd = jax.block_until_ready(out_odd)
    assert out_odd.shape == (20, num_classes)
    assert jnp.allclose(out_odd, ref_bf16[:20], atol=2e-2, rtol=2e-2), "ragged batch mismatch"

    print("KERNEL_OK")
</pallas_src>

<mosaic_0001>
module attributes {stable_mosaic.version = 11 : i64} {
  func.func @_mlp_kernel(%arg0: i32, %arg1: memref<16x128xf32, #tpu.memory_space<vmem>>, %arg2: memref<128x512xf32, #tpu.memory_space<vmem>>, %arg3: memref<1x512xf32, #tpu.memory_space<vmem>>, %arg4: memref<512x256xf32, #tpu.memory_space<vmem>>, %arg5: memref<1x256xf32, #tpu.memory_space<vmem>>, %arg6: memref<256x128xf32, #tpu.memory_space<vmem>>, %arg7: memref<1x128xf32, #tpu.memory_space<vmem>>, %arg8: memref<128x128xf32, #tpu.memory_space<vmem>>, %arg9: memref<1x128xf32, #tpu.memory_space<vmem>>, %arg10: memref<128x128xf32, #tpu.memory_space<vmem>>, %arg11: memref<1x128xf32, #tpu.memory_space<vmem>>, %arg12: memref<16x128xf32, #tpu.memory_space<vmem>>) attributes {dimension_semantics = [#tpu.dimension_semantics<parallel>], iteration_bounds = array<i64: 2>, scalar_prefetch = 0 : i64, scratch_operands = 0 : i64, tpu.core_type = #tpu.core_type<tc>, window_params = [{transform_indices = @transform_0, window_bounds = array<i64: 16, 128>}, {pipeline_mode = #tpu.pipeline_mode<synchronous>, transform_indices = @transform_1, window_bounds = array<i64: 128, 512>}, {pipeline_mode = #tpu.pipeline_mode<synchronous>, transform_indices = @transform_2, window_bounds = array<i64: 1, 512>}, {pipeline_mode = #tpu.pipeline_mode<synchronous>, transform_indices = @transform_3, window_bounds = array<i64: 512, 256>}, {pipeline_mode = #tpu.pipeline_mode<synchronous>, transform_indices = @transform_4, window_bounds = array<i64: 1, 256>}, {pipeline_mode = #tpu.pipeline_mode<synchronous>, transform_indices = @transform_5, window_bounds = array<i64: 256, 128>}, {pipeline_mode = #tpu.pipeline_mode<synchronous>, transform_indices = @transform_6, window_bounds = array<i64: 1, 128>}, {pipeline_mode = #tpu.pipeline_mode<synchronous>, transform_indices = @transform_7, window_bounds = array<i64: 128, 128>}, {pipeline_mode = #tpu.pipeline_mode<synchronous>, transform_indices = @transform_8, window_bounds = array<i64: 1, 128>}, {pipeline_mode = #tpu.pipeline_mode<synchronous>, transform_indices = @transform_9, window_bounds = array<i64: 128, 128>}, {pipeline_mode = #tpu.pipeline_mode<synchronous>, transform_indices = @transform_10, window_bounds = array<i64: 1, 128>}, {transform_indices = @transform_11, window_bounds = array<i64: 16, 128>}]} {
    %c0 = arith.constant 0 : index
    %c0_0 = arith.constant 0 : index
    %0 = vector.load %arg1[%c0, %c0_0] : memref<16x128xf32, #tpu.memory_space<vmem>>, vector<16x128xf32>
    %c0_1 = arith.constant 0 : index
    %c0_2 = arith.constant 0 : index
    %1 = vector.load %arg2[%c0_1, %c0_2] : memref<128x512xf32, #tpu.memory_space<vmem>>, vector<128x512xf32>
    %cst = arith.constant dense<0.000000e+00> : vector<16x512xf32>
    %2 = tpu.matmul %0, %1, %cst {dimension_numbers = #tpu.dot_dimension_numbers<[1], [0], [0], [1], [0, 0, 1, 1], [], []>} : vector<16x128xf32>, vector<128x512xf32>, vector<16x512xf32> -> vector<16x512xf32>
    %c0_3 = arith.constant 0 : index
    %c0_4 = arith.constant 0 : index
    %3 = vector.load %arg3[%c0_3, %c0_4] : memref<1x512xf32, #tpu.memory_space<vmem>>, vector<1x512xf32>
    %4 = vector.broadcast %3 : vector<1x512xf32> to vector<16x512xf32>
    %5 = arith.addf %2, %4 : vector<16x512xf32>
    %cst_5 = arith.constant 0.000000e+00 : f32
    %6 = vector.broadcast %cst_5 : f32 to vector<16x512xf32>
    %7 = arith.maximumf %5, %6 : vector<16x512xf32>
    %c0_6 = arith.constant 0 : index
    %c0_7 = arith.constant 0 : index
    %8 = vector.load %arg4[%c0_6, %c0_7] : memref<512x256xf32, #tpu.memory_space<vmem>>, vector<512x256xf32>
    %cst_8 = arith.constant dense<0.000000e+00> : vector<16x256xf32>
    %9 = tpu.matmul %7, %8, %cst_8 {dimension_numbers = #tpu.dot_dimension_numbers<[1], [0], [0], [1], [0, 0, 1, 1], [], []>} : vector<16x512xf32>, vector<512x256xf32>, vector<16x256xf32> -> vector<16x256xf32>
    %c0_9 = arith.constant 0 : index
    %c0_10 = arith.constant 0 : index
    %10 = vector.load %arg5[%c0_9, %c0_10] : memref<1x256xf32, #tpu.memory_space<vmem>>, vector<1x256xf32>
    %11 = vector.broadcast %10 : vector<1x256xf32> to vector<16x256xf32>
    %12 = arith.addf %9, %11 : vector<16x256xf32>
    %cst_11 = arith.constant 0.000000e+00 : f32
    %13 = vector.broadcast %cst_11 : f32 to vector<16x256xf32>
    %14 = arith.maximumf %12, %13 : vector<16x256xf32>
    %c0_12 = arith.constant 0 : index
    %c0_13 = arith.constant 0 : index
    %15 = vector.load %arg6[%c0_12, %c0_13] : memref<256x128xf32, #tpu.memory_space<vmem>>, vector<256x128xf32>
    %cst_14 = arith.constant dense<0.000000e+00> : vector<16x128xf32>
    %16 = tpu.matmul %14, %15, %cst_14 {dimension_numbers = #tpu.dot_dimension_numbers<[1], [0], [0], [1], [0, 0, 1, 1], [], []>} : vector<16x256xf32>, vector<256x128xf32>, vector<16x128xf32> -> vector<16x128xf32>
    %c0_15 = arith.constant 0 : index
    %c0_16 = arith.constant 0 : index
    %17 = vector.load %arg7[%c0_15, %c0_16] : memref<1x128xf32, #tpu.memory_space<vmem>>, vector<1x128xf32>
    %18 = vector.broadcast %17 : vector<1x128xf32> to vector<16x128xf32>
    %19 = arith.addf %16, %18 : vector<16x128xf32>
    %cst_17 = arith.constant 0.000000e+00 : f32
    %20 = vector.broadcast %cst_17 : f32 to vector<16x128xf32>
    %21 = arith.maximumf %19, %20 : vector<16x128xf32>
    %c0_18 = arith.constant 0 : index
    %c0_19 = arith.constant 0 : index
    %22 = vector.load %arg8[%c0_18, %c0_19] : memref<128x128xf32, #tpu.memory_space<vmem>>, vector<128x128xf32>
    %cst_20 = arith.constant dense<0.000000e+00> : vector<16x128xf32>
    %23 = tpu.matmul %21, %22, %cst_20 {dimension_numbers = #tpu.dot_dimension_numbers<[1], [0], [0], [1], [0, 0, 1, 1], [], []>} : vector<16x128xf32>, vector<128x128xf32>, vector<16x128xf32> -> vector<16x128xf32>
    %c0_21 = arith.constant 0 : index
    %c0_22 = arith.constant 0 : index
    %24 = vector.load %arg9[%c0_21, %c0_22] : memref<1x128xf32, #tpu.memory_space<vmem>>, vector<1x128xf32>
    %25 = vector.broadcast %24 : vector<1x128xf32> to vector<16x128xf32>
    %26 = arith.addf %23, %25 : vector<16x128xf32>
    %cst_23 = arith.constant 0.000000e+00 : f32
    %27 = vector.broadcast %cst_23 : f32 to vector<16x128xf32>
    %28 = arith.maximumf %26, %27 : vector<16x128xf32>
    %c0_24 = arith.constant 0 : index
    %c0_25 = arith.constant 0 : index
    %29 = vector.load %arg10[%c0_24, %c0_25] : memref<128x128xf32, #tpu.memory_space<vmem>>, vector<128x128xf32>
    %cst_26 = arith.constant dense<0.000000e+00> : vector<16x128xf32>
    %30 = tpu.matmul %28, %29, %cst_26 {dimension_numbers = #tpu.dot_dimension_numbers<[1], [0], [0], [1], [0, 0, 1, 1], [], []>} : vector<16x128xf32>, vector<128x128xf32>, vector<16x128xf32> -> vector<16x128xf32>
    %c0_27 = arith.constant 0 : index
    %c0_28 = arith.constant 0 : index
    %31 = vector.load %arg11[%c0_27, %c0_28] : memref<1x128xf32, #tpu.memory_space<vmem>>, vector<1x128xf32>
    %32 = vector.broadcast %31 : vector<1x128xf32> to vector<16x128xf32>
    %33 = arith.addf %30, %32 : vector<16x128xf32>
    %c0_29 = arith.constant 0 : index
    %c0_30 = arith.constant 0 : index
    %34 = vector.load %arg12[%c0_29, %c0_30] : memref<16x128xf32, #tpu.memory_space<vmem>>, vector<16x128xf32>
    tpu.vector_store %arg12[%c0_29, %c0_30], %33 {strides = array<i32>} : memref<16x128xf32, #tpu.memory_space<vmem>>, vector<16x128xf32>,
    return
  }
  func.func @transform_0(%arg0: i32) -> (i32, i32) {
    %c0_i32 = arith.constant 0 : i32
    %c0_i32_0 = arith.constant 0 : i32
    return %arg0, %c0_i32 : i32, i32
  }
  func.func @transform_1(%arg0: i32) -> (i32, i32) {
    %c0_i32 = arith.constant 0 : i32
    %c0_i32_0 = arith.constant 0 : i32
    %c0_i32_1 = arith.constant 0 : i32
    return %c0_i32, %c0_i32_0 : i32, i32
  }
  func.func @transform_2(%arg0: i32) -> (i32, i32) {
    %c0_i32 = arith.constant 0 : i32
    %c0_i32_0 = arith.constant 0 : i32
    %c0_i32_1 = arith.constant 0 : i32
    return %c0_i32, %c0_i32_0 : i32, i32
  }
  func.func @transform_3(%arg0: i32) -> (i32, i32) {
    %c0_i32 = arith.constant 0 : i32
    %c0_i32_0 = arith.constant 0 : i32
    %c0_i32_1 = arith.constant 0 : i32
    return %c0_i32, %c0_i32_0 : i32, i32
  }
  func.func @transform_4(%arg0: i32) -> (i32, i32) {
    %c0_i32 = arith.constant 0 : i32
    %c0_i32_0 = arith.constant 0 : i32
    %c0_i32_1 = arith.constant 0 : i32
    return %c0_i32, %c0_i32_0 : i32, i32
  }
  func.func @transform_5(%arg0: i32) -> (i32, i32) {
    %c0_i32 = arith.constant 0 : i32
    %c0_i32_0 = arith.constant 0 : i32
    %c0_i32_1 = arith.constant 0 : i32
    return %c0_i32, %c0_i32_0 : i32, i32
  }
  func.func @transform_6(%arg0: i32) -> (i32, i32) {
    %c0_i32 = arith.constant 0 : i32
    %c0_i32_0 = arith.constant 0 : i32
    %c0_i32_1 = arith.constant 0 : i32
    return %c0_i32, %c0_i32_0 : i32, i32
  }
  func.func @transform_7(%arg0: i32) -> (i32, i32) {
    %c0_i32 = arith.constant 0 : i32
    %c0_i32_0 = arith.constant 0 : i32
    %c0_i32_1 = arith.constant 0 : i32
    return %c0_i32, %c0_i32_0 : i32, i32
  }
  func.func @transform_8(%arg0: i32) -> (i32, i32) {
    %c0_i32 = arith.constant 0 : i32
    %c0_i32_0 = arith.constant 0 : i32
    %c0_i32_1 = arith.constant 0 : i32
    return %c0_i32, %c0_i32_0 : i32, i32
  }
  func.func @transform_9(%arg0: i32) -> (i32, i32) {
    %c0_i32 = arith.constant 0 : i32
    %c0_i32_0 = arith.constant 0 : i32
    %c0_i32_1 = arith.constant 0 : i32
    return %c0_i32, %c0_i32_0 : i32, i32
  }
  func.func @transform_10(%arg0: i32) -> (i32, i32) {
    %c0_i32 = arith.constant 0 : i32
    %c0_i32_0 = arith.constant 0 : i32
    %c0_i32_1 = arith.constant 0 : i32
    return %c0_i32, %c0_i32_0 : i32, i32
  }
  func.func @transform_11(%arg0: i32) -> (i32, i32) {
    %c0_i32 = arith.constant 0 : i32
    %c0_i32_0 = arith.constant 0 : i32
    return %arg0, %c0_i32 : i32, i32
  }
}

</mosaic_0001>

<bundles_post_ra>
// kernel: genre_classifier_forward.1
= control target key start
LH: loop header
LB: loop body
LE: loop exit
PB: predicated region body
PF: predicated region fallthrough
CT: control target
= control target key end

     0   :  { %s2645_s0 = inlined_call_operand.hbm [shape: f32[32,128], index: 0, kind: input, shape index: {}]   ;;  %s2646_s1 = inlined_call_operand.hbm [shape: f32[128,512], index: 1, kind: input, shape index: {}]   ;;  %s2647_s2 = inlined_call_operand.vmem [shape: f32[1,512], index: 2, kind: input, shape index: {}]   ;;  %s2648_s3 = inlined_call_operand.hbm [shape: f32[512,256], index: 3, kind: input, shape index: {}]   ;;  %s2649_s4 = inlined_call_operand.vmem [shape: f32[1,256], index: 4, kind: input, shape index: {}]   ;;  %s2650_s5 = inlined_call_operand.hbm [shape: f32[256,128], index: 5, kind: input, shape index: {}]   ;;  %s2651_s6 = inlined_call_operand.vmem [shape: f32[1,128], index: 6, kind: input, shape index: {}]   ;;  %s2652_s7 = inlined_call_operand.hbm [shape: f32[128,128], index: 7, kind: input, shape index: {}]   ;;  %s2653_s8 = inlined_call_operand.vmem [shape: f32[1,128], index: 8, kind: input, shape index: {}]   ;;  %s2654_s9 = inlined_call_operand.hbm [shape: f32[128,128], index: 9, kind: input, shape index: {}]   ;;  %s2655_s10 = inlined_call_operand.vmem [shape: f32[1,128], index: 10, kind: input, shape index: {}]   ;;  %s2656_s11 = inlined_call_operand.vmem [shape: f32[32,128], index: 11, kind: output, shape index: {}]  }
   0x1   :  { %2665 = sst [smem:[#allocation16_spill]] %s2646_s1 }
   0x2   :  { %2666 = sst [smem:[#allocation17_spill]] %s2650_s5 }
   0x3   :  { %2667 = sst [smem:[#allocation18_spill]] %s2653_s8 }
   0x4   :  { %2668 = sst [smem:[#allocation19_spill]] %s2655_s10 }
   0x5   :  { %2669 = sst [smem:[#allocation20_spill]] %s2656_s11 }
   0x6   :  { %16 = vsyncpa [#allocation3], 0 }
   0x7   :  { %18 = vsyncpa [#allocation3 + $0x1], 0 }
   0x8   :  { %19 = vsyncpa [#allocation5], 0 }
   0x9   :  { %20 = vsyncpa [#allocation8], 0 }
   0xa   :  { %21 = vsyncpa [#allocation11], 0  ;;  %s2316_s17 = smov 0   ;;  %s2318_s18 = smov 0  }
   0xb   :  { %s2320_s19 = smov 0   ;;  %s2322_s20 = smov 0  }
   0xc LB: > { %s2243_s21 = smov [#allocation4]   ;;  %s2657_s23 = sadd.s32 4294967295, %s2241_s20   ;;  %s2241_s20 = sphi %s2322_s20, %s2690_s20   ;;  %s2237_s19 = sphi %s2320_s19, %s2689_s19   ;;  %s2233_s18 = sphi %s2318_s18, %s2688_s18   ;;  %s2229_s17 = sphi %s2316_s17, %s2687_s17  }
   0xd   : > { %s306_s22 = sshll.u32 %s2243_s21, 4  ;;  %p1463_p0 = scmp.ge.s32.totalorder %s2241_s20, 1  ;;  %s2345_s22 = int_to_ptr.vmem [resolvable:$true] %s306_s22 }
   0xe   : > { %p2340_p1 = scmp.eq.s32.totalorder %s2657_s23, 0  ;;  %p294_p2 = scmp.lt.s32.totalorder %s2241_s20, 3 }
   0xf   : > { %s2244_s26 = smov [#allocation7]   ;;  %s2245_s29 = smov [#allocation6]  }
  0x10   : > { %s2670_s24 = scalar_select %p2340_p1, 1, 0 }
  0x11   : > { %p2347_p3 = pnand %p1463_p0, %p294_p2  ;;  %s338_s27 = sshll.u32 %s2244_s26, 4  ;;  %s2359_s27 = int_to_ptr.vmem [resolvable:$true] %s338_s27 }
  0x12   : > { %s2361_s30 = sshll.u32 %s2245_s29, 4  ;;  %s2673_s1 = sld [smem:[#allocation16_spill]]  ;;  %s323_s30 = int_to_ptr.vmem [resolvable:$true] %s2361_s30 }
  0x13   : > { %s2671_s25 = scalar_select %p2347_p3, 1, 0 }
  0x14   : > { %p1950_p4 = pneg %p2347_p3 }
  0x16   : > { %p2355_p5 = pnand %p1950_p4, %p2340_p1 }
  0x18   : > { %s2025_s14 = scalar_lea.hbm %s2673_s1, 8192  ;;  %p2371_p7 = pneg %p2355_p5 }
  0x19   : > { %p2026_p6 = scmp.ne.s32.totalorder %s2673_s1, %s2025_s14  ;;  %p2032_p10 = scmp.lt.u32.totalorder %s2025_s14, %s2673_s1 }
  0x1b   : > { %p2028_p8 = pnand %p2371_p7, %p2026_p6 }
  0x1d   : > { %p2029_p9 = pneg %p2028_p8 }
  0x1f   : > { %p2034_p11 = pnand %p2032_p10, %p2029_p9 }
  0x21   : > { %2037 = shalt.err (!%p2034_p11)
}
  0x22   : > { %s2038_s12 = scalar_lea.vmem %s2345_s22, 8192  ;;  %p2046_p2 = scmp.lt.s32.totalorder %s2345_s22, %s2345_s22 }
  0x23   : > { %p2039_p12 = scmp.ne.s32.totalorder %s2345_s22, %s2038_s12  ;;  %p2047_p4 = scmp.lt.s32.totalorder %s2038_s12, %s2038_s12 }
  0x25   : > { %p2041_p13 = pnand %p2039_p12, %p2371_p7  ;;  %p2048_p6 = por %p2047_p4, %p2046_p2 }
  0x27   : > { %p2042_p0 = pneg %p2041_p13 }
  0x29   : > { %p2049_p8 = pnand %p2048_p6, %p2042_p0 }
  0x2b   : > { %2052 = shalt.err (!%p2049_p8)
}
  0x2c   : > { %s2246_s13 = smov 512   ;;  %s2247_s14 = smov 32  }
  0x2d   : > { %1953 = dma.hbm_to_vmem [thread:$0]  (!%p2355_p5), %s2673_s1, 8192, %s2345_s22, [#allocation5], %s2246_s13, %s2246_s13, %s2247_s14  }
  0x2e   : > { %s2675_s5 = sld [smem:[#allocation17_spill]] }
  0x34   : > { %s2053_s23 = scalar_lea.hbm %s2675_s5, 4096 }
  0x35   : > { %p2054_p9 = scmp.ne.s32.totalorder %s2675_s5, %s2053_s23  ;;  %p2060_p12 = scmp.lt.u32.totalorder %s2053_s23, %s2675_s5 }
  0x37   : > { %p2056_p10 = pnand %p2054_p9, %p2371_p7 }
  0x39   : > { %p2057_p11 = pneg %p2056_p10 }
  0x3b   : > { %p2062_p13 = pnand %p2060_p12, %p2057_p11 }
  0x3d   : > { %2065 = shalt.err (!%p2062_p13)
}
  0x3e   : > { %s2066_s22 = scalar_lea.vmem %s2359_s27, 4096  ;;  %p2074_p6 = scmp.lt.s32.totalorder %s2359_s27, %s2359_s27 }
  0x3f   : > { %p2067_p0 = scmp.ne.s32.totalorder %s2359_s27, %s2066_s22  ;;  %p2075_p8 = scmp.lt.s32.totalorder %s2066_s22, %s2066_s22 }
  0x41   : > { %p2069_p2 = pnand %p2067_p0, %p2371_p7  ;;  %p2076_p9 = por %p2075_p8, %p2074_p6 }
  0x43   : > { %p2070_p4 = pneg %p2069_p2 }
  0x45   : > { %p2077_p10 = pnand %p2076_p9, %p2070_p4 }
  0x47   : > { %2080 = shalt.err (!%p2077_p10)
}
  0x48   : > { %s2661_s10 = smov 128   ;;  %s2663_s8 = smov 8  }
  0x49   : > { %1959 = dma.hbm_to_vmem [thread:$0]  (!%p2355_p5), %s2675_s5, 4096, %s2359_s27, [#allocation8], %s2661_s10, %s2661_s10, %s2663_s8  }
  0x4a   : > { %s2081_s15 = scalar_lea.hbm %s2648_s3, 16384 }
  0x4b   : > { %p2082_p11 = scmp.ne.s32.totalorder %s2648_s3, %s2081_s15  ;;  %p2088_p0 = scmp.lt.u32.totalorder %s2081_s15, %s2648_s3 }
  0x4d   : > { %p2084_p12 = pnand %p2082_p11, %p2371_p7 }
  0x4f   : > { %p2085_p13 = pneg %p2084_p12 }
  0x51   : > { %p2090_p2 = pnand %p2088_p0, %p2085_p13 }
  0x53   : > { %2093 = shalt.err (!%p2090_p2)
}
  0x54   : > { %s2094_s22 = scalar_lea.vmem %s323_s30, 16384  ;;  %p2102_p9 = scmp.lt.s32.totalorder %s323_s30, %s323_s30 }
  0x55   : > { %p2095_p4 = scmp.ne.s32.totalorder %s323_s30, %s2094_s22  ;;  %p2103_p10 = scmp.lt.s32.totalorder %s2094_s22, %s2094_s22 }
  0x57   : > { %p2097_p6 = pnand %p2095_p4, %p2371_p7  ;;  %p2104_p3 = por %p2103_p10, %p2102_p9 }
  0x59   : > { %p2098_p8 = pneg %p2097_p6 }
  0x5b   : > { %p2105_p1 = pnand %p2104_p3, %p2098_p8 }
  0x5d   : > { %2108 = shalt.err (!%p2105_p1)
}
  0x5e   : > { %s2250_s27 = smov 256   ;;  %s2251_s11 = smov 16  }
  0x5f   : > { %1956 = dma.hbm_to_vmem [thread:$0]  (!%p2355_p5), %s2648_s3, 16384, %s323_s30, [#allocation5], %s2250_s27, %s2250_s27, %s2251_s11  }
  0x60   : > { %s2252_s14 = smov [#allocation9]   ;;  %s2253_s16 = smov [#allocation10]  }
  0x61   : > { %s354_s15 = sshll.u32 %s2252_s14, 4  ;;  %s370_s26 = sshll.u32 %s2253_s16, 4  ;;  %s355_s15 = int_to_ptr.vmem [resolvable:$true] %s354_s15  ;;  %s371_s26 = int_to_ptr.vmem [resolvable:$true] %s370_s26 }
  0x62   : > { %s2109_s22 = scalar_lea.hbm %s2652_s7, 2048 }
  0x63   : > { %p2110_p1 = scmp.ne.s32.totalorder %s2652_s7, %s2109_s22  ;;  %p2116_p12 = scmp.lt.u32.totalorder %s2109_s22, %s2652_s7 }
  0x65   : > { %p2112_p3 = pnand %p2110_p1, %p2371_p7 }
  0x67   : > { %p2113_p11 = pneg %p2112_p3 }
  0x69   : > { %p2118_p13 = pnand %p2116_p12, %p2113_p11 }
  0x6b   : > { %2121 = shalt.err (!%p2118_p13)
}
  0x6c   : > { %s2122_s30 = scalar_lea.vmem %s355_s15, 2048  ;;  %p2130_p6 = scmp.lt.s32.totalorder %s355_s15, %s355_s15 }
  0x6d   : > { %p2123_p0 = scmp.ne.s32.totalorder %s355_s15, %s2122_s30  ;;  %p2131_p8 = scmp.lt.s32.totalorder %s2122_s30, %s2122_s30 }
  0x6f   : > { %p2125_p2 = pnand %p2123_p0, %p2371_p7  ;;  %p2132_p9 = por %p2131_p8, %p2130_p6 }
  0x71   : > { %p2126_p4 = pneg %p2125_p2 }
  0x73   : > { %p2133_p10 = pnand %p2132_p9, %p2126_p4 }
  0x75   : > { %2136 = shalt.err (!%p2133_p10)
}
  0x76   : > { %s2676_s10 = smov 8   ;;  %s2677_s8 = smov 128  }
  0x77   : > { %1962 = dma.hbm_to_vmem [thread:$0]  (!%p2355_p5), %s2652_s7, 2048, %s355_s15, [#allocation8], %s2677_s8, %s2677_s8, %s2676_s10  }
  0x78   : > { %s2137_s23 = scalar_lea.hbm %s2654_s9, 2048 }
  0x79   : > { %p2138_p1 = scmp.ne.s32.totalorder %s2654_s9, %s2137_s23  ;;  %p2144_p12 = scmp.lt.u32.totalorder %s2137_s23, %s2654_s9 }
  0x7b   : > { %p2140_p3 = pnand %p2138_p1, %p2371_p7 }
  0x7d   : > { %p2141_p11 = pneg %p2140_p3 }
  0x7f   : > { %p2146_p13 = pnand %p2144_p12, %p2141_p11 }
  0x81   : > { %2149 = shalt.err (!%p2146_p13)
}
  0x82   : > { %s2150_s12 = scalar_lea.vmem %s371_s26, 2048  ;;  %p2158_p6 = scmp.lt.s32.totalorder %s371_s26, %s371_s26 }
  0x83   : > { %p2151_p0 = scmp.ne.s32.totalorder %s371_s26, %s2150_s12  ;;  %p2159_p8 = scmp.lt.s32.totalorder %s2150_s12, %s2150_s12 }
  0x85   : > { %p2153_p2 = pnand %p2151_p0, %p2371_p7  ;;  %p2160_p9 = por %p2159_p8, %p2158_p6 }
  0x87   : > { %p2154_p4 = pneg %p2153_p2 }
  0x89   : > { %p2161_p10 = pnand %p2160_p9, %p2154_p4 }
  0x8b   : > { %2164 = shalt.err (!%p2161_p10)
}
  0x8c   : > { %1965 = dma.hbm_to_vmem [thread:$0]  (!%p2355_p5), %s2654_s9, 2048, %s371_s26, [#allocation11], %s2677_s8, %s2677_s8, %s2676_s10  }
  0x8d   : > { %s2480_s28 = sadd.s32 1, %s2241_s20   ;;  %s34_s30 = sadd.s32 1, %s2237_s19 }
  0x8e   : > { %s31_s21 = ssub.s32 %s2241_s20, %s2480_s28  ;;  %p41_p1 = scmp.ne.s32.totalorder %s2237_s19, %s2233_s18 }
  0x8f   : > { %p32_p7 = scmp.eq.s32.totalorder %s31_s21, 0  ;;  %p42_p3 = scmp.eq.s32.totalorder %s2241_s20, 0 }
  0x90   : > { %p47_p11 = scmp.ne.s32.totalorder %s2233_s18, %s2229_s17  ;;  %p2678_p13 = scmp.ne.s32.totalorder %s2670_s24, 0 }
  0x91   : > { %s2491_s1 = scalar_select %p32_p7, %s2237_s19, %s34_s30  }
  0x92   : > { %p43_p12 = por %p42_p3, %p41_p1  ;;  %p2495_p0 = por %p2678_p13, %p47_p11 }
  0x93   : > { %p1975_p2 = scmp.lt.s32.totalorder %s2241_s20, 2  ;;  %s387_s27 = sand.u32 1, %s2237_s19  }
  0x94   : > { %s1470_s26 = sshll.u32 %s387_s27, 4  ;;  %s1487_s11 = sshll.u32 %s2241_s20, 8 }
  0x95   : > { %s2505_s14 = scalar_lea.hbm %s2645_s0, %s1487_s11  ;;  %s391_s17 = scalar_lea.vmem [#allocation2], %s1470_s26 }
  0x96   : > { %s398_s16 = sshll.u32 %s391_s17, 4  ;;  %p2509_p5 = pnand %p1975_p2, %p43_p12  ;;  %s2507_s16 = int_to_ptr.vmem [resolvable:$true] %s398_s16 }
  0x97   : > { %s2513_s12 = scalar_lea.sflag [#allocation3], %s387_s27  ;;  %s2165_s15 = scalar_lea.hbm %s2505_s14, 256 }
  0x98   : > { %p2166_p4 = scmp.ne.s32.totalorder %s2505_s14, %s2165_s15  ;;  %p2167_p6 = pneg %p2509_p5 }
  0x99   : > { %s2170_s30 = scalar_lea.hbm %s2645_s0, 512  ;;  %p2171_p10 = scmp.lt.u32.totalorder %s2505_s14, %s2645_s0 }
  0x9a   : > { %p2168_p8 = pnand %p2167_p6, %p2166_p4  ;;  %p2172_p7 = scmp.lt.u32.totalorder %s2170_s30, %s2165_s15 }
  0x9b   : > { %p2174_p3 = scmp.lt.u32.totalorder %s2165_s15, %s2505_s14 }
  0x9c   : > { %p2169_p9 = pneg %p2168_p8  ;;  %p2173_p1 = por %p2172_p7, %p2171_p10 }
  0x9e   : > { %p2175_p11 = por %p2174_p3, %p2173_p1 }
  0xa0   : > { %p2176_p12 = pnand %p2175_p11, %p2169_p9 }
  0xa2   : > { %2179 = shalt.err (!%p2176_p12)
}
  0xa3   : > { %s2180_s27 = scalar_lea.vmem %s2507_s16, 256  ;;  %s2254_s23 = smov [#allocation2]  }
  0xa4   : > { %p2181_p13 = scmp.ne.s32.totalorder %s2507_s16, %s2180_s27  ;;  %s2185_s13 = sshll.u32 %s2254_s23, 4  ;;  %s2186_s13 = int_to_ptr.vmem [resolvable:$false] %s2185_s13 }
  0xa5   : > { %s2187_s17 = scalar_lea.vmem %s2186_s13, 512  ;;  %p2188_p8 = scmp.lt.s32.totalorder %s2507_s16, %s2186_s13 }
  0xa6   : > { %p2183_p2 = pnand %p2181_p13, %p2167_p6  ;;  %p2189_p10 = scmp.lt.s32.totalorder %s2187_s17, %s2180_s27 }
  0xa8   : > { %p2184_p4 = pneg %p2183_p2  ;;  %p2190_p7 = por %p2189_p10, %p2188_p8 }
  0xaa   : > { %p2191_p1 = pnand %p2190_p7, %p2184_p4 }
  0xac   : > { %2194 = shalt.err (!%p2191_p1)
}
  0xad   : > { %1969 = dma.hbm_to_vmem [thread:$0]  (!%p2509_p5), %s2505_s14, 256, %s2507_s16, %s2513_s12, %s2677_s8, %s2677_s8, %s2676_s10  }
  0xae   : > { %p2681_p6 = scmp.ne.s32.totalorder %s2671_s25, 0 }
  0xaf   : > { %s412_s15 = sand.u32 (!%p2681_p6), 1, %s2233_s18  }
  0xb0   : > { %410 = sbr.rel (%p2681_p6) target bundleno = 1384 (0x568), region = 64  ;;  %s2547_s22 = sshll.u32 (!%p2681_p6), %s412_s15, 4 }
  0xb1   : > { %s413_s21 = scalar_lea.sflag (!%p2681_p6), [#allocation3], %s412_s15  ;;  %s416_s30 = scalar_lea.vmem (!%p2681_p6), [#allocation2], %s2547_s22 }
  0xb7   : > { %2212 = dma.done.wait (%p2495_p0), %s413_s21, 256  }
  0xb8   : > { %2214 = vsyncadd (%p2495_p0), %s413_s21, 4294967040  ;;  %p2682_p9 = scmp.ne.s32.totalorder %s2670_s24, 0 }
  0xba   : > { %2216 = dma.done.wait (%p2682_p9), [#allocation5], 24576  }
  0xbb   : > { %2218 = vsyncadd (%p2682_p9), [#allocation5], 4294942720 }
  0xbc   : > { %2220 = dma.done.wait (%p2682_p9), [#allocation8], 6144  }
  0xbd   : > { %2222 = vsyncadd (%p2682_p9), [#allocation8], 4294961152 }
  0xbe   : > { %2224 = dma.done.wait (%p2682_p9), [#allocation11], 2048  }
  0xbf   : > { %2226 = vsyncadd (%p2682_p9), [#allocation11], 4294965248  ;;  %v2255_v0 = vmov 0.0   ;;  %v485_v1 = vld [vmem:[#allocation4 + $0x8] sm:$0xff]  ;;  %v484_v3 = vld [vmem:[#allocation4] sm:$0xff]  ;;  %s2683_s12 = sld [smem:[#allocation18_spill]] }
  0xc0   : > { %634 = vmatprep.mubr.f32.mxu1 %v2255_v0  ;;  %v489_v2 = vld [vmem:[#allocation4 + $0x28] sm:$0xff]  ;;  %v488_v5 = vld [vmem:[#allocation4 + $0x20] sm:$0xff]  ;;  %v735_v45 = vld [vmem:[#allocation6 + $0x18] sm:$0xff]  ;;  %s2684_s26 = sadd.s32 4294967295, %s2241_s20   ;;  %s2685_s17 = sld [smem:[#allocation19_spill]] }
  0xc1   : > { %v1632_v4 = vpack.c.bf16 %v489_v2, %v485_v1  ;;  %v493_v6 = vld [vmem:[#allocation4 + $0x48] sm:$0xff]  ;;  %v1634_v8 = vpack.c.bf16 %v488_v5, %v484_v3  ;;  %v492_v10 = vld [vmem:[#allocation4 + $0x40] sm:$0xff]  ;;  %v734_v48 = vld [vmem:[#allocation6 + $0x10] sm:$0xff]  ;;  %s1480_s11 = sshll.u32 %s2684_s26, 1  ;;  %s2686_s21 = sld [smem:[#allocation20_spill]] }
  0xc2   : > { %v497_v7 = vld [vmem:[#allocation4 + $0x68] sm:$0xff]  ;;  %v496_v11 = vld [vmem:[#allocation4 + $0x60] sm:$0xff]  ;;  %v739_v50 = vld [vmem:[#allocation6 + $0x38] sm:$0xff]  ;;  %p477_p0 = scmp.lt.s32.totalorder %s1480_s11, 3 }
  0xc3   : > { %v1636_v9 = vpack.c.bf16 %v497_v7, %v493_v6  ;;  %v501_v12 = vld [vmem:[#allocation4 + $0x88] sm:$0xff]  ;;  %1633 = vmatprep.subr.bf16.mxu1 %v1632_v4  ;;  %v1638_v14 = vpack.c.bf16 %v496_v11, %v492_v10  ;;  %v500_v16 = vld [vmem:[#allocation4 + $0x80] sm:$0xff]  ;;  %v738_v55 = vld [vmem:[#allocation6 + $0x30] sm:$0xff] }
  0xc4   : > { %v505_v13 = vld [vmem:[#allocation4 + $0xa8] sm:$0xff]  ;;  %1635 = vmatpush1.bf16.msra.mxu1 %v1634_v8  ;;  %v504_v17 = vld [vmem:[#allocation4 + $0xa0] sm:$0xff]  ;;  %v743_v60 = vld [vmem:[#allocation6 + $0x58] sm:$0xff]  ;;  %s2692_s11 = smov (!%p477_p0, %s1480_s11), 3 }
  0xc5   : > { %1637 = vmatprep.subr.bf16.mxu1 %v1636_v9  ;;  %v1640_v15 = vpack.c.bf16 %v505_v13, %v501_v12  ;;  %v509_v18 = vld [vmem:[#allocation4 + $0xc8] sm:$0xff]  ;;  %v1642_v20 = vpack.c.bf16 %v504_v17, %v500_v16  ;;  %v508_v22 = vld [vmem:[#allocation4 + $0xc0] sm:$0xff]  ;;  %v487_v61 = vld [vmem:[#allocation4 + $0x18] sm:$0xff]  ;;  %s1481_s27 = sshll.u32 %s2692_s11, 3 }
  0xc6   : > { %v513_v19 = vld [vmem:[#allocation4 + $0xe8] sm:$0xff]  ;;  %v512_v23 = vld [vmem:[#allocation4 + $0xe0] sm:$0xff]  ;;  %v491_v62 = vld [vmem:[#allocation4 + $0x38] sm:$0xff] }
  0xc7   : > { %v1644_v21 = vpack.c.bf16 %v513_v19, %v509_v18  ;;  %v517_v24 = vld [vmem:[#allocation4 + $0x108] sm:$0xff]  ;;  %v1646_v26 = vpack.c.bf16 %v512_v23, %v508_v22  ;;  %v516_v28 = vld [vmem:[#allocation4 + $0x100] sm:$0xff]  ;;  %v742_v3 = vld [vmem:[#allocation6 + $0x50] sm:$0xff]  ;;  %v1664_v7 = vpack.c.bf16 %v491_v62, %v487_v61 }
  0xc8   : > { %1639 = vmatpush1.bf16.msra.mxu1 %v1638_v14  ;;  %v521_v25 = vld [vmem:[#allocation4 + $0x128] sm:$0xff]  ;;  %v520_v29 = vld [vmem:[#allocation4 + $0x120] sm:$0xff]  ;;  %v747_v6 = vld [vmem:[#allocation6 + $0x78] sm:$0xff] }
  0xc9   : > { %1641 = vmatprep.subr.bf16.mxu1 %v1640_v15  ;;  %v1648_v27 = vpack.c.bf16 %v521_v25, %v517_v24  ;;  %v525_v30 = vld [vmem:[#allocation4 + $0x148] sm:$0xff]  ;;  %v1650_v32 = vpack.c.bf16 %v520_v29, %v516_v28  ;;  %v524_v34 = vld [vmem:[#allocation4 + $0x140] sm:$0xff]  ;;  %v486_v8 = vld [vmem:[#allocation4 + $0x10] sm:$0xff] }
  0xca   : > { %v529_v31 = vld [vmem:[#allocation4 + $0x168] sm:$0xff]  ;;  %v528_v35 = vld [vmem:[#allocation4 + $0x160] sm:$0xff]  ;;  %v490_v9 = vld [vmem:[#allocation4 + $0x30] sm:$0xff] }
  0xcb   : > { %v1652_v33 = vpack.c.bf16 %v529_v31, %v525_v30  ;;  %v533_v36 = vld [vmem:[#allocation4 + $0x188] sm:$0xff]  ;;  %v1654_v38 = vpack.c.bf16 %v528_v35, %v524_v34  ;;  %v532_v39 = vld [vmem:[#allocation4 + $0x180] sm:$0xff]  ;;  %v495_v10 = vld [vmem:[#allocation4 + $0x58] sm:$0xff]  ;;  %v1666_v17 = vpack.c.bf16 %v490_v9, %v486_v8 }
  0xcc   : > { %1643 = vmatpush1.bf16.msra.mxu1 %v1642_v20  ;;  %v537_v37 = vld [vmem:[#allocation4 + $0x1a8] sm:$0xff]  ;;  %v536_v41 = vld [vmem:[#allocation4 + $0x1a0] sm:$0xff]  ;;  %v499_v11 = vld [vmem:[#allocation4 + $0x78] sm:$0xff] }
  0xcd   : > { %1645 = vmatprep.subr.bf16.mxu1 %v1644_v21  ;;  %v1656_v40 = vpack.c.bf16 %v537_v37, %v533_v36  ;;  %v541_v42 = vld [vmem:[#allocation4 + $0x1c8] sm:$0xff]  ;;  %v732_v46 = vld [vmem:[#allocation6] sm:$0xff]  ;;  %v1658_v51 = vpack.c.bf16 %v536_v41, %v532_v39  ;;  %v746_v15 = vld [vmem:[#allocation6 + $0x70] sm:$0xff]  ;;  %v1668_v20 = vpack.c.bf16 %v499_v11, %v495_v10 }
  0xce   : > { %v545_v43 = vld [vmem:[#allocation4 + $0x1e8] sm:$0xff]  ;;  %v1698_v52 = vpack.c.bf16 %v734_v48, %v732_v46  ;;  %v736_v54 = vld [vmem:[#allocation6 + $0x20] sm:$0xff]  ;;  %v751_v19 = vld [vmem:[#allocation6 + $0x98] sm:$0xff] }
  0xcf   : > { %v733_v44 = vld [vmem:[#allocation6 + $0x8] sm:$0xff]  ;;  %v1660_v57 = vpack.c.bf16 %v545_v43, %v541_v42  ;;  %v540_v58 = vld [vmem:[#allocation4 + $0x1c0] sm:$0xff]  ;;  %v1702_v63 = vpack.c.bf16 %v738_v55, %v736_v54  ;;  %v494_v21 = vld [vmem:[#allocation4 + $0x50] sm:$0xff] }
  0xd0   : > { %1647 = vmatpush1.bf16.msra.mxu1 %v1646_v26  ;;  %v1696_v47 = vpack.c.bf16 %v735_v45, %v733_v44  ;;  %v737_v49 = vld [vmem:[#allocation6 + $0x28] sm:$0xff]  ;;  %v544_v59 = vld [vmem:[#allocation4 + $0x1e0] sm:$0xff]  ;;  %v498_v22 = vld [vmem:[#allocation4 + $0x70] sm:$0xff] }
  0xd1   : > { %1649 = vmatprep.subr.bf16.mxu1 %v1648_v27  ;;  %v1700_v53 = vpack.c.bf16 %v739_v50, %v737_v49  ;;  %v741_v56 = vld [vmem:[#allocation6 + $0x48] sm:$0xff]  ;;  %v740_v2 = vld [vmem:[#allocation6 + $0x40] sm:$0xff]  ;;  %v1662_v4 = vpack.c.bf16 %v544_v59, %v540_v58  ;;  %v503_v23 = vld [vmem:[#allocation4 + $0x98] sm:$0xff]  ;;  %v1670_v29 = vpack.c.bf16 %v498_v22, %v494_v21 }
  0xd2   : > { %1697 = vmatprep.subr.bf16.mxu0 %v1696_v47  ;;  %v1704_v1 = vpack.c.bf16 %v743_v60, %v741_v56  ;;  %v745_v5 = vld [vmem:[#allocation6 + $0x68] sm:$0xff]  ;;  %v1706_v12 = vpack.c.bf16 %v742_v3, %v740_v2  ;;  %v744_v14 = vld [vmem:[#allocation6 + $0x60] sm:$0xff]  ;;  %v507_v24 = vld [vmem:[#allocation4 + $0xb8] sm:$0xff] }
  0xd3   : > { %1699 = vmatpush1.bf16.msra.mxu0 %v1698_v52  ;;  %v1708_v13 = vpack.c.bf16 %v747_v6, %v745_v5  ;;  %v2569_v16 = vld [vmem:[%s416_s30] sm:$0xff]  ;;  %v749_v18 = vld [vmem:[#allocation6 + $0x88] sm:$0xff]  ;;  %v1710_v25 = vpack.c.bf16 %v746_v15, %v744_v14  ;;  %v511_v36 = vld [vmem:[#allocation4 + $0xd8] sm:$0xff] }
  0xd4   : > { %1651 = vmatpush1.bf16.msra.mxu1 %v1650_v32  ;;  %1701 = vmatprep.subr.bf16.mxu0 %v1700_v53  ;;  %v1712_v26 = vpack.c.bf16 %v751_v19, %v749_v18  ;;  %v748_v27 = vld [vmem:[#allocation6 + $0x80] sm:$0xff]  ;;  %v750_v28 = vld [vmem:[#allocation6 + $0x90] sm:$0xff]  ;;  %v2575_v30 = vld [vmem:[%s416_s30 + $0x8] sm:$0xff]  ;;  %s480_s30 = scalar_lea.vmem %s2686_s21, %s1481_s27 }
  0xd5   : > { %1653 = vmatprep.subr.bf16.mxu1 %v1652_v33  ;;  %v753_v31 = vld [vmem:[#allocation6 + $0xa8] sm:$0xff]  ;;  %v755_v32 = vld [vmem:[#allocation6 + $0xb8] sm:$0xff]  ;;  %v1672_v33 = vpack.c.bf16 %v507_v24, %v503_v23  ;;  %v502_v34 = vld [vmem:[#allocation4 + $0x90] sm:$0xff] }
  0xd6   : > { %v506_v35 = vld [vmem:[#allocation4 + $0xb0] sm:$0xff]  ;;  %v515_v37 = vld [vmem:[#allocation4 + $0xf8] sm:$0xff]  ;;  %v1716_v39 = vpack.c.bf16 %v755_v32, %v753_v31  ;;  %v757_v43 = vld [vmem:[#allocation6 + $0xc8] sm:$0xff] }
  0xd7   : > { %1703 = vmatpush1.bf16.msra.mxu0 %v1702_v63  ;;  %v754_v41 = vld [vmem:[#allocation6 + $0xb0] sm:$0xff]  ;;  %v1674_v42 = vpack.c.bf16 %v506_v35, %v502_v34  ;;  %v759_v44 = vld [vmem:[#allocation6 + $0xd8] sm:$0xff]  ;;  %v1676_v45 = vpack.c.bf16 %v515_v37, %v511_v36  ;;  %v756_v52 = vld [vmem:[#allocation6 + $0xc0] sm:$0xff] }
  0xd8   : > { %1655 = vmatpush1.bf16.msra.mxu1 %v1654_v38  ;;  %1705 = vmatprep.subr.bf16.mxu0 %v1704_v1  ;;  %v1714_v38 = vpack.c.bf16 %v750_v28, %v748_v27  ;;  %v510_v46 = vld [vmem:[#allocation4 + $0xd0] sm:$0xff]  ;;  %v519_v48 = vld [vmem:[#allocation4 + $0x118] sm:$0xff]  ;;  %v761_v55 = vld [vmem:[#allocation6 + $0xe8] sm:$0xff] }
  0xd9   : > { %1657 = vmatprep.subr.bf16.mxu1 %v1656_v40  ;;  %v752_v40 = vld [vmem:[#allocation6 + $0xa0] sm:$0xff]  ;;  %v514_v47 = vld [vmem:[#allocation4 + $0xf0] sm:$0xff]  ;;  %v523_v49 = vld [vmem:[#allocation4 + $0x138] sm:$0xff] }
  0xda   : > { %v1718_v50 = vpack.c.bf16 %v754_v41, %v752_v40  ;;  %v758_v53 = vld [vmem:[#allocation6 + $0xd0] sm:$0xff]  ;;  %v1678_v54 = vpack.c.bf16 %v514_v47, %v510_v46  ;;  %v763_v56 = vld [vmem:[#allocation6 + $0xf8] sm:$0xff]  ;;  %v760_v1 = vld [vmem:[#allocation6 + $0xe0] sm:$0xff] }
  0xdb   : > { %1707 = vmatpush1.bf16.msra.mxu0 %v1706_v12  ;;  %v518_v58 = vld [vmem:[#allocation4 + $0x110] sm:$0xff]  ;;  %v527_v60 = vld [vmem:[#allocation4 + $0x158] sm:$0xff]  ;;  %v1722_v62 = vpack.c.bf16 %v758_v53, %v756_v52  ;;  %v1724_v63 = vpack.c.bf16 %v763_v56, %v761_v55  ;;  %v772_v37 = vld [vmem:[#allocation6 + $0x140] sm:$0xff] }
  0xdc   : > { %1659 = vmatpush1.bf16.msra.mxu1 %v1658_v51  ;;  %1709 = vmatprep.subr.bf16.mxu0 %v1708_v13  ;;  %v1720_v51 = vpack.c.bf16 %v759_v44, %v757_v43  ;;  %v522_v59 = vld [vmem:[#allocation4 + $0x130] sm:$0xff]  ;;  %v531_v61 = vld [vmem:[#allocation4 + $0x178] sm:$0xff]  ;;  %v764_v13 = vld [vmem:[#allocation6 + $0x100] sm:$0xff] }
  0xdd   : > { %1661 = vmatprep.subr.bf16.mxu1 %v1660_v57  ;;  %v1680_v57 = vpack.c.bf16 %v523_v49, %v519_v48  ;;  %v762_v2 = vld [vmem:[#allocation6 + $0xf0] sm:$0xff]  ;;  %v1682_v3 = vpack.c.bf16 %v522_v59, %v518_v58  ;;  %v767_v5 = vld [vmem:[#allocation6 + $0x118] sm:$0xff]  ;;  %v1684_v6 = vpack.c.bf16 %v531_v61, %v527_v60  ;;  %v777_v40 = vld [vmem:[#allocation6 + $0x168] sm:$0xff] }
  0xde   : > { %v530_v8 = vld [vmem:[#allocation4 + $0x170] sm:$0xff]  ;;  %v535_v9 = vld [vmem:[#allocation4 + $0x198] sm:$0xff]  ;;  %v1726_v11 = vpack.c.bf16 %v762_v2, %v760_v1  ;;  %v776_v44 = vld [vmem:[#allocation6 + $0x160] sm:$0xff] }
  0xdf   : > { %1711 = vmatpush1.bf16.msra.mxu0 %v1710_v25  ;;  %v539_v10 = vld [vmem:[#allocation4 + $0x1b8] sm:$0xff]  ;;  %v766_v14 = vld [vmem:[#allocation6 + $0x110] sm:$0xff]  ;;  %v781_v46 = vld [vmem:[#allocation6 + $0x188] sm:$0xff] }
  0xe0   : > { %1663 = vmatpush1.bf16.msra.mxu1 %v1662_v4  ;;  %1713 = vmatprep.subr.bf16.mxu0 %v1712_v26  ;;  %v765_v4 = vld [vmem:[#allocation6 + $0x108] sm:$0xff]  ;;  %v771_v18 = vld [vmem:[#allocation6 + $0x138] sm:$0xff]  ;;  %v1688_v19 = vpack.c.bf16 %v539_v10, %v535_v9  ;;  %v538_v21 = vld [vmem:[#allocation4 + $0x1b0] sm:$0xff]  ;;  %v1730_v24 = vpack.c.bf16 %v766_v14, %v764_v13 }
  0xe1   : > { %1665 = vmatprep.subr.bf16.mxu1 %v1664_v7  ;;  %v526_v7 = vld [vmem:[#allocation4 + $0x150] sm:$0xff]  ;;  %v1728_v12 = vpack.c.bf16 %v767_v5, %v765_v4  ;;  %v543_v22 = vld [vmem:[#allocation4 + $0x1d8] sm:$0xff]  ;;  %v768_v26 = vld [vmem:[#allocation6 + $0x120] sm:$0xff] }
  0xe2   : > { %v1686_v15 = vpack.c.bf16 %v530_v8, %v526_v7  ;;  %v547_v23 = vld [vmem:[#allocation4 + $0x1f8] sm:$0xff]  ;;  %v770_v27 = vld [vmem:[#allocation6 + $0x130] sm:$0xff]  ;;  %v785_v52 = vld [vmem:[#allocation6 + $0x1a8] sm:$0xff] }
  0xe3   : > { %635 = vmatmul.mubr.f32.vlgmr.msra.gmra.mrb[0].mxu1 %v2569_v16  ;;  %1715 = vmatpush1.bf16.msra.mxu0 %v1714_v38  ;;  %v775_v31 = vld [vmem:[#allocation6 + $0x158] sm:$0xff]  ;;  %v1692_v32 = vpack.c.bf16 %v547_v23, %v543_v22  ;;  %v546_v34 = vld [vmem:[#allocation4 + $0x1f0] sm:$0xff]  ;;  %v1734_v35 = vpack.c.bf16 %v770_v27, %v768_v26  ;;  %v784_v56 = vld [vmem:[#allocation6 + $0x1a0] sm:$0xff] }
  0xe4   : > { %1667 = vmatpush1.bf16.msra.mxu1 %v1666_v17  ;;  %640 = vmatprep.mubr.f32.mxu1 %v2255_v0  ;;  %v769_v17 = vld [vmem:[#allocation6 + $0x128] sm:$0xff]  ;;  %v774_v38 = vld [vmem:[#allocation6 + $0x150] sm:$0xff]  ;;  %v779_v41 = vld [vmem:[#allocation6 + $0x178] sm:$0xff] }
  0xe5   : > { %1669 = vmatprep.subr.bf16.mxu1 %v1668_v20  ;;  %1717 = vmatprep.subr.bf16.mxu0 %v1716_v39  ;;  %v534_v20 = vld [vmem:[#allocation4 + $0x190] sm:$0xff]  ;;  %v1732_v25 = vpack.c.bf16 %v771_v18, %v769_v17  ;;  %v1740_v43 = vpack.c.bf16 %v779_v41, %v777_v40  ;;  %v783_v47 = vld [vmem:[#allocation6 + $0x198] sm:$0xff]  ;;  %v789_v58 = vld [vmem:[#allocation6 + $0x1c8] sm:$0xff] }
  0xe6   : > { %v1690_v28 = vpack.c.bf16 %v538_v21, %v534_v20  ;;  %v1744_v49 = vpack.c.bf16 %v783_v47, %v781_v46  ;;  %v787_v53 = vld [vmem:[#allocation6 + $0x1b8] sm:$0xff]  ;;  %v788_v61 = vld [vmem:[#allocation6 + $0x1c0] sm:$0xff]  ;;  %v797_v5 = vld [vmem:[#allocation6 + $0x208] sm:$0xff] }
  0xe7   : > { %641 = vmatmul.mubr.f32.gmra.mrb[2].mxu1 %v2575_v30  ;;  %1719 = vmatpush1.bf16.msra.mxu0 %v1718_v50  ;;  %v780_v50 = vld [vmem:[#allocation6 + $0x180] sm:$0xff]  ;;  %v1748_v55 = vpack.c.bf16 %v787_v53, %v785_v52  ;;  %v791_v59 = vld [vmem:[#allocation6 + $0x1d8] sm:$0xff]  ;;  %v1047_v9 = vld [vmem:[#allocation7 + $0x88] sm:$0xff] }
  0xe8   : > { %1671 = vmatpush1.bf16.msra.mxu1 %v1670_v29  ;;  %711 = vmatprep.mubr.f32.mxu1 %v2255_v0  ;;  %v773_v29 = vld [vmem:[#allocation6 + $0x148] sm:$0xff]  ;;  %v1752_v60 = vpack.c.bf16 %v791_v59, %v789_v58  ;;  %v795_v1 = vld [vmem:[#allocation6 + $0x1f8] sm:$0xff]  ;;  %v1046_v8 = vld [vmem:[#allocation7 + $0x80] sm:$0xff] }
  0xe9   : > { %1673 = vmatprep.subr.bf16.mxu1 %v1672_v33  ;;  %1721 = vmatprep.subr.bf16.mxu0 %v1720_v51  ;;  %v542_v33 = vld [vmem:[#allocation4 + $0x1d0] sm:$0xff]  ;;  %v1736_v36 = vpack.c.bf16 %v775_v31, %v773_v29  ;;  %v1030_v10 = vld [vmem:[#allocation7] sm:$0xff]  ;;  %v1049_v14 = vld [vmem:[#allocation7 + $0x98] sm:$0xff] }
  0xea   : > { %v1694_v39 = vpack.c.bf16 %v546_v34, %v542_v33  ;;  %v782_v51 = vld [vmem:[#allocation6 + $0x190] sm:$0xff]  ;;  %v1050_v20 = vld [vmem:[#allocation7 + $0xa0] sm:$0xff]  ;;  %v1051_v21 = vld [vmem:[#allocation7 + $0xa8] sm:$0xff] }
  0xeb   : > { %1723 = vmatpush1.bf16.msra.mxu0 %v1722_v62  ;;  %v790_v62 = vld [vmem:[#allocation6 + $0x1d0] sm:$0xff]  ;;  %v1832_v23 = vpack.c.bf16 %v1051_v21, %v1050_v20  ;;  %v1053_v27 = vld [vmem:[#allocation7 + $0xb8] sm:$0xff]  ;;  %v1054_v33 = vld [vmem:[#allocation7 + $0xc0] sm:$0xff] }
  0xec   : > { %1675 = vmatpush1.bf16.msra.mxu1 %v1674_v42  ;;  %1725 = vmatprep.subr.bf16.mxu0 %v1724_v63  ;;  %v1738_v42 = vpack.c.bf16 %v774_v38, %v772_v37  ;;  %v793_v63 = vld [vmem:[#allocation6 + $0x1e8] sm:$0xff]  ;;  %v1048_v13 = vld [vmem:[#allocation7 + $0x90] sm:$0xff]  ;;  %v1038_v37 = vld [vmem:[#allocation7 + $0x40] sm:$0xff] }
  0xed   : > { %1677 = vmatprep.subr.bf16.mxu1 %v1676_v45  ;;  %v778_v45 = vld [vmem:[#allocation6 + $0x170] sm:$0xff]  ;;  %v1756_v2 = vpack.c.bf16 %v795_v1, %v793_v63  ;;  %v1828_v17 = vpack.c.bf16 %v1049_v14, %v1048_v13  ;;  %v1055_v34 = vld [vmem:[#allocation7 + $0xc8] sm:$0xff]  ;;  %v1057_v40 = vld [vmem:[#allocation7 + $0xd8] sm:$0xff] }
  0xee   : > { %v1742_v48 = vpack.c.bf16 %v778_v45, %v776_v44  ;;  %v1032_v18 = vld [vmem:[#allocation7 + $0x10] sm:$0xff]  ;;  %v1039_v38 = vld [vmem:[#allocation7 + $0x48] sm:$0xff]  ;;  %v1041_v44 = vld [vmem:[#allocation7 + $0x58] sm:$0xff] }
  0xef   : > { %1727 = vmatpush1.bf16.msra.mxu0 %v1726_v11  ;;  %v1824_v11 = vpack.c.bf16 %v1047_v9, %v1046_v8  ;;  %v1052_v26 = vld [vmem:[#allocation7 + $0xb0] sm:$0xff]  ;;  %v1842_v41 = vpack.c.bf16 %v1039_v38, %v1038_v37  ;;  %v1058_v45 = vld [vmem:[#allocation7 + $0xe0] sm:$0xff]  ;;  %v1059_v46 = vld [vmem:[#allocation7 + $0xe8] sm:$0xff] }
  0xf0   : > { %1679 = vmatpush1.bf16.msra.mxu1 %v1678_v54  ;;  %1729 = vmatprep.subr.bf16.mxu0 %v1728_v12  ;;  %v1746_v54 = vpack.c.bf16 %v782_v51, %v780_v50  ;;  %v1031_v12 = vld [vmem:[#allocation7 + $0x8] sm:$0xff]  ;;  %v1836_v29 = vpack.c.bf16 %v1053_v27, %v1052_v26  ;;  %v1036_v31 = vld [vmem:[#allocation7 + $0x30] sm:$0xff]  ;;  %v2588_v52 = vld [vmem:[%s2647_s2] sm:$0xf] }
  0xf1   : > { %1681 = vmatprep.subr.bf16.mxu1 %v1680_v57  ;;  %v786_v57 = vld [vmem:[#allocation6 + $0x1b0] sm:$0xff]  ;;  %v796_v59 = vld [vmem:[#allocation6 + $0x200] sm:$0xff]  ;;  %v807_v8 = vld [vmem:[#allocation6 + $0x258] sm:$0xff] }
  0xf2   : > { %v804_v14 = vld [vmem:[#allocation6 + $0x240] sm:$0xff]  ;;  %v823_v37 = vld [vmem:[#allocation6 + $0x2d8] sm:$0xff] }
  0xf3   : > { %1731 = vmatpush1.bf16.msra.mxu0 %v1730_v24  ;;  %v1034_v24 = vld [vmem:[#allocation7 + $0x20] sm:$0xff] }
  0xf4   : > { %1683 = vmatpush1.bf16.msra.mxu1 %v1682_v3  ;;  %1733 = vmatprep.subr.bf16.mxu0 %v1732_v25  ;;  %v794_v3 = vld [vmem:[#allocation6 + $0x1f0] sm:$0xff]  ;;  %v1035_v25 = vld [vmem:[#allocation7 + $0x28] sm:$0xff]  ;;  %v808_v21 = vld [vmem:[#allocation6 + $0x260] sm:$0xff] }
  0xf5   : > { %1685 = vmatprep.subr.bf16.mxu1 %v1684_v6  ;;  %v799_v6 = vld [vmem:[#allocation6 + $0x218] sm:$0xff]  ;;  %v812_v27 = vld [vmem:[#allocation6 + $0x280] sm:$0xff] }
  0xf6   : > { %v1760_v7 = vpack.c.bf16 %v799_v6, %v797_v5 }
  0xf7   : > { %1735 = vmatpush1.bf16.msra.mxu0 %v1734_v35 }
  0xf8   : > { %1687 = vmatpush1.bf16.msra.mxu1 %v1686_v15  ;;  %1737 = vmatprep.subr.bf16.mxu0 %v1736_v36  ;;  %v1826_v15 = vpack.c.bf16 %v1031_v12, %v1030_v10  ;;  %v1840_v36 = vpack.c.bf16 %v1055_v34, %v1054_v33  ;;  %v816_v34 = vld [vmem:[#allocation6 + $0x2a0] sm:$0xff] }
  0xf9   : > { %1689 = vmatprep.subr.bf16.mxu1 %v1688_v19  ;;  %v1033_v19 = vld [vmem:[#allocation7 + $0x18] sm:$0xff] }
  0xfa   : > { %v1830_v22 = vpack.c.bf16 %v1033_v19, %v1032_v18  ;;  %v811_v18 = vld [vmem:[#allocation6 + $0x278] sm:$0xff] }
  0xfb   : > { %1739 = vmatpush1.bf16.msra.mxu0 %v1738_v42 }
  0xfc   : > { %1691 = vmatpush1.bf16.msra.mxu1 %v1690_v28  ;;  %1741 = vmatprep.subr.bf16.mxu0 %v1740_v43  ;;  %v1834_v28 = vpack.c.bf16 %v1035_v25, %v1034_v24  ;;  %v1040_v43 = vld [vmem:[#allocation7 + $0x50] sm:$0xff]  ;;  %v815_v24 = vld [vmem:[#allocation6 + $0x298] sm:$0xff] }
  0xfd   : > { %1693 = vmatprep.subr.bf16.mxu1 %v1692_v32  ;;  %v1037_v32 = vld [vmem:[#allocation7 + $0x38] sm:$0xff]  ;;  %v1846_v47 = vpack.c.bf16 %v1041_v44, %v1040_v43 }
  0xfe   : > { %v1838_v35 = vpack.c.bf16 %v1037_v32, %v1036_v31  ;;  %v819_v31 = vld [vmem:[#allocation6 + $0x2b8] sm:$0xff] }
  0xff   : > { %1743 = vmatpush1.bf16.msra.mxu0 %v1742_v48  ;;  %v1848_v48 = vpack.c.bf16 %v1059_v46, %v1058_v45  ;;  %v827_v43 = vld [vmem:[#allocation6 + $0x2f8] sm:$0xff] }
 0x100   : > { %1695 = vmatpush1.bf16.msra.mxu1 %v1694_v39  ;;  %1745 = vmatprep.subr.bf16.mxu0 %v1744_v49  ;;  %v1056_v39 = vld [vmem:[#allocation7 + $0xd0] sm:$0xff]  ;;  %v550_v49 = vlaneseq }
 0x101   : > { %1825 = vmatprep.subr.bf16.mxu1 %v1824_v11  ;;  %v1844_v42 = vpack.c.bf16 %v1057_v40, %v1056_v39  ;;  %v820_v40 = vld [vmem:[#allocation6 + $0x2c0] sm:$0xff] }
 0x102   : > { %v2582_v50 = vshrl.u32 %v550_v49, 7  ;;  %v829_v49 = vld [vmem:[#allocation6 + $0x308] sm:$0xff] }
 0x103   : > { %712 = vmatmul.mubr.f32.vlgmr.msra.gmra.mrb[4].mxu1 %v2569_v16  ;;  %1747 = vmatpush1.bf16.msra.mxu0 %v1746_v54  ;;  %v1750_v16 = vpack.c.bf16 %v786_v57, %v784_v56 }
 0x104   : > { %717 = vmatprep.mubr.f32.mxu1 %v2255_v0  ;;  %1749 = vmatprep.subr.bf16.mxu0 %v1748_v55  ;;  %v1754_v0 = vpack.c.bf16 %v790_v62, %v788_v61  ;;  %v552_v51 = vsub.s32 0, %v2582_v50  ;;  %v556_v53 = vsub.s32 1, %v2582_v50  ;;  %v801_v61 = vld [vmem:[#allocation6 + $0x228] sm:$0xff]  ;;  %v803_v62 = vld [vmem:[#allocation6 + $0x238] sm:$0xff]  ;;  %v564_v44 = vsub.s32 3, %v2582_v50 }
 0x105   : > { %1827 = vmatpush3.bf16.msra.mxu1 %v1826_v15  ;;  %v806_v15 = vld [vmem:[#allocation6 + $0x250] sm:$0xff] }
 0x106   : > { %1829 = vmatprep.subr.bf16.mxu1 %v1828_v17  ;;  %v553_v54 = vrot.slane %v2588_v52, %v552_v51  ;;  %v557_v55 = vrot.slane %v2588_v52, %v556_v53  ;;  %v809_v17 = vld [vmem:[#allocation6 + $0x268] sm:$0xff]  ;;  %v1770_v19 = vpack.c.bf16 %v806_v15, %v804_v14 }
 0x107   : > { %718 = vmatmul.mubr.f32.gmra.mrb[6].mxu1 %v2575_v30  ;;  %1751 = vmatpush1.bf16.msra.mxu0 %v1750_v16  ;;  %v792_v30 = vld [vmem:[#allocation6 + $0x1e0] sm:$0xff]  ;;  %v798_v16 = vld [vmem:[#allocation6 + $0x210] sm:$0xff]  ;;  %v1772_v20 = vpack.c.bf16 %v811_v18, %v809_v17 }
 0x108   : > { %1753 = vmatprep.subr.bf16.mxu0 %v1752_v60  ;;  %v1758_v4 = vpack.c.bf16 %v794_v3, %v792_v30  ;;  %v1762_v63 = vpack.c.bf16 %v798_v16, %v796_v59  ;;  %v1764_v30 = vpack.c.bf16 %v803_v62, %v801_v61  ;;  %v800_v3 = vld [vmem:[#allocation6 + $0x220] sm:$0xff]  ;;  %v830_v16 = vld [vmem:[#allocation6 + $0x310] sm:$0xff]  ;;  %v833_v61 = vld [vmem:[#allocation6 + $0x328] sm:$0xff] }
 0x109   : > { %1831 = vmatpush3.bf16.msra.mxu1 %v1830_v22  ;;  %v810_v22 = vld [vmem:[#allocation6 + $0x270] sm:$0xff]  ;;  %v828_v59 = vld [vmem:[#allocation6 + $0x300] sm:$0xff]  ;;  %v835_v62 = vld [vmem:[#allocation6 + $0x338] sm:$0xff] }
 0x10a   : > { %1833 = vmatprep.subr.bf16.mxu1 %v1832_v23  ;;  %v813_v23 = vld [vmem:[#allocation6 + $0x288] sm:$0xff]  ;;  %v1774_v25 = vpack.c.bf16 %v810_v22, %v808_v21  ;;  %v840_v17 = vld [vmem:[#allocation6 + $0x360] sm:$0xff]  ;;  %v842_v18 = vld [vmem:[#allocation6 + $0x370] sm:$0xff] }
 0x10b   : > { %1755 = vmatpush1.bf16.msra.mxu0 %v1754_v0  ;;  %v1776_v26 = vpack.c.bf16 %v815_v24, %v813_v23  ;;  %v1806_v21 = vpack.c.bf16 %v842_v18, %v840_v17  ;;  %v844_v23 = vld [vmem:[#allocation6 + $0x380] sm:$0xff]  ;;  %v846_v24 = vld [vmem:[#allocation6 + $0x390] sm:$0xff] }
 0x10c   : > { %1757 = vmatprep.subr.bf16.mxu0 %v1756_v2 }
 0x10d   : > { %1835 = vmatpush3.bf16.msra.mxu1 %v1834_v28  ;;  %v814_v28 = vld [vmem:[#allocation6 + $0x290] sm:$0xff] }
 0x10e   : > { %1837 = vmatprep.subr.bf16.mxu1 %v1836_v29  ;;  %v817_v29 = vld [vmem:[#allocation6 + $0x2a8] sm:$0xff]  ;;  %v1778_v32 = vpack.c.bf16 %v814_v28, %v812_v27  ;;  %v1810_v27 = vpack.c.bf16 %v846_v24, %v844_v23  ;;  %v1154_v24 = vld [vmem:[#allocation9 + $0x40] sm:$0xff] }
 0x10f   : > { %1759 = vmatpush1.bf16.msra.mxu0 %v1758_v4  ;;  %v802_v4 = vld [vmem:[#allocation6 + $0x230] sm:$0xff]  ;;  %v1780_v33 = vpack.c.bf16 %v819_v31, %v817_v29  ;;  %v848_v29 = vld [vmem:[#allocation6 + $0x3a0] sm:$0xff] }
 0x110   : > { %1761 = vmatprep.subr.bf16.mxu0 %v1760_v7  ;;  %v805_v7 = vld [vmem:[#allocation6 + $0x248] sm:$0xff]  ;;  %v1766_v11 = vpack.c.bf16 %v802_v4, %v800_v3  ;;  %v832_v3 = vld [vmem:[#allocation6 + $0x320] sm:$0xff]  ;;  %v834_v4 = vld [vmem:[#allocation6 + $0x330] sm:$0xff] }
 0x111   : > { %1839 = vmatpush3.bf16.msra.mxu1 %v1838_v35  ;;  %v1768_v13 = vpack.c.bf16 %v807_v8, %v805_v7  ;;  %v818_v35 = vld [vmem:[#allocation6 + $0x2b0] sm:$0xff]  ;;  %v839_v7 = vld [vmem:[#allocation6 + $0x358] sm:$0xff]  ;;  %v1798_v8 = vpack.c.bf16 %v834_v4, %v832_v3 }
 0x112   : > { %1841 = vmatprep.subr.bf16.mxu1 %v1840_v36  ;;  %v821_v36 = vld [vmem:[#allocation6 + $0x2c8] sm:$0xff]  ;;  %v1782_v38 = vpack.c.bf16 %v818_v35, %v816_v34  ;;  %v850_v31 = vld [vmem:[#allocation6 + $0x3b0] sm:$0xff]  ;;  %v560_v35 = vsub.s32 2, %v2582_v50 }
 0x113   : > { %v1784_v39 = vpack.c.bf16 %v823_v37, %v821_v36  ;;  %v1814_v34 = vpack.c.bf16 %v850_v31, %v848_v29  ;;  %v852_v37 = vld [vmem:[#allocation6 + $0x3c0] sm:$0xff] }
 0x114   : > { %v1158_v31 = vld [vmem:[#allocation9 + $0x60] sm:$0xff] }
 0x115   : > { %1843 = vmatpush3.bf16.msra.mxu1 %v1842_v41  ;;  %v822_v41 = vld [vmem:[#allocation6 + $0x2d0] sm:$0xff] }
 0x116   : > { %1845 = vmatprep.subr.bf16.mxu1 %v1844_v42  ;;  %v825_v42 = vld [vmem:[#allocation6 + $0x2e8] sm:$0xff]  ;;  %v1786_v45 = vpack.c.bf16 %v822_v41, %v820_v40  ;;  %v859_v40 = vld [vmem:[#allocation6 + $0x3f8] sm:$0xff] }
 0x117   : > { %v1788_v46 = vpack.c.bf16 %v827_v43, %v825_v42  ;;  %v561_v42 = vrot.slane %v2588_v52, %v560_v35  ;;  %v1161_v35 = vld [vmem:[#allocation9 + $0x78] sm:$0xff] }
 0x119   : > { %1847 = vmatpush3.bf16.msra.mxu1 %v1846_v47  ;;  %v824_v47 = vld [vmem:[#allocation6 + $0x2e0] sm:$0xff] }
 0x11a   : > { %1849 = vmatprep.subr.bf16.mxu1 %v1848_v48  ;;  %v826_v48 = vld [vmem:[#allocation6 + $0x2f0] sm:$0xff] }
 0x1b6   : > { %v636_v56 = vpop.f32.mrb[0].mxu1 }
 0x1b7   : > { %v637_v57 = vadd.f32 %v636_v56, %v553_v54  ;;  %v638_v58 = vpop.f32.mrb[1].mxu1  ;;  %v1790_v56 = vpack.c.bf16 %v826_v48, %v824_v47 }
 0x1b8   : > { %v639_v60 = vadd.f32 %v638_v58, %v557_v55 }
 0x1b9   : > { %v724_v2 = vmax.f32 %v637_v57, 0.0 }
 0x1ba   : > { %v725_v0 = vmax.f32 %v639_v60, 0.0  ;;  %v642_v1 = vpop.f32.mrb[2].mxu1 }
 0x1bb   : > { %v643_v5 = vadd.f32 %v642_v1, %v553_v54  ;;  %v644_v6 = vpop.f32.mrb[3].mxu1  ;;  %v831_v54 = vld [vmem:[#allocation6 + $0x318] sm:$0xff] }
 0x1bc   : > { %936 = vmatprep.mubr.f32.mxu0 %v725_v0  ;;  %v645_v9 = vadd.f32 %v644_v6, %v557_v55  ;;  %v2599_v55 = vrot.slane %v2588_v52, %v564_v44  ;;  %v1792_v58 = vpack.c.bf16 %v831_v54, %v829_v49  ;;  %v837_v6 = vld [vmem:[#allocation6 + $0x348] sm:$0xff]  ;;  %v856_v44 = vld [vmem:[#allocation6 + $0x3e0] sm:$0xff] }
 0x1bd   : > { %937 = vmatmul.mubr.f32.vlgmr.msra.gmra.mrb[0].mxu0 %v724_v2  ;;  %v728_v10 = vmax.f32 %v643_v5, 0.0  ;;  %v1042_v52 = vld [vmem:[#allocation7 + $0x60] sm:$0xff] }
 0x1be   : > { %1763 = vmatpush1.bf16.msra.mxu0 %v1762_v63  ;;  %v729_v12 = vmax.f32 %v645_v9, 0.0  ;;  %v1794_v63 = vpack.c.bf16 %v830_v16, %v828_v59  ;;  %v1800_v9 = vpack.c.bf16 %v839_v7, %v837_v6  ;;  %v1043_v59 = vld [vmem:[#allocation7 + $0x68] sm:$0xff] }
 0x1bf   : > { %1765 = vmatprep.subr.bf16.mxu0 %v1764_v30  ;;  %v1796_v30 = vpack.c.bf16 %v835_v62, %v833_v61  ;;  %v1850_v16 = vpack.c.bf16 %v1043_v59, %v1042_v52  ;;  %v1061_v61 = vld [vmem:[#allocation7 + $0xf8] sm:$0xff]  ;;  %v1044_v62 = vld [vmem:[#allocation7 + $0x70] sm:$0xff]  ;;  %v1250_v59 = vld [vmem:[#allocation10 + $0x20] sm:$0xff] }
 0x1c0   : > { %942 = vmatprep.mubr.f32.mxu0 %v729_v12  ;;  %v841_v12 = vld [vmem:[#allocation6 + $0x368] sm:$0xff] }
 0x1c1   : > { %943 = vmatmul.mubr.f32.gmra.mrb[2].mxu0 %v728_v10  ;;  %v836_v10 = vld [vmem:[#allocation6 + $0x340] sm:$0xff]  ;;  %1851 = vmatpush3.bf16.msra.mxu1 %v1850_v16  ;;  %v1251_v16 = vld [vmem:[#allocation10 + $0x28] sm:$0xff] }
 0x1c2   : > { %1767 = vmatpush1.bf16.msra.mxu0 %v1766_v11  ;;  %v838_v11 = vld [vmem:[#allocation6 + $0x350] sm:$0xff] }
 0x1c3   : > { %1769 = vmatprep.subr.bf16.mxu0 %v1768_v13  ;;  %v843_v13 = vld [vmem:[#allocation6 + $0x378] sm:$0xff]  ;;  %v1802_v14 = vpack.c.bf16 %v838_v11, %v836_v10 }
 0x1c4   : > { %v1804_v15 = vpack.c.bf16 %v843_v13, %v841_v12  ;;  %v1149_v10 = vld [vmem:[#allocation9 + $0x18] sm:$0xff] }
 0x1c6   : > { %1771 = vmatpush1.bf16.msra.mxu0 %v1770_v19  ;;  %v845_v19 = vld [vmem:[#allocation6 + $0x388] sm:$0xff] }
 0x1c7   : > { %1773 = vmatprep.subr.bf16.mxu0 %v1772_v20  ;;  %v847_v20 = vld [vmem:[#allocation6 + $0x398] sm:$0xff] }
 0x1c8   : > { %v1808_v22 = vpack.c.bf16 %v847_v20, %v845_v19  ;;  %v1150_v19 = vld [vmem:[#allocation9 + $0x20] sm:$0xff]  ;;  %v1151_v20 = vld [vmem:[#allocation9 + $0x28] sm:$0xff] }
 0x1ca   : > { %1775 = vmatpush1.bf16.msra.mxu0 %v1774_v25  ;;  %v849_v25 = vld [vmem:[#allocation6 + $0x3a8] sm:$0xff] }
 0x1cb   : > { %1777 = vmatprep.subr.bf16.mxu0 %v1776_v26  ;;  %v851_v26 = vld [vmem:[#allocation6 + $0x3b8] sm:$0xff] }
 0x1cc   : > { %v1812_v28 = vpack.c.bf16 %v851_v26, %v849_v25  ;;  %v1155_v25 = vld [vmem:[#allocation9 + $0x48] sm:$0xff] }
 0x1cd   : > { %v1872_v26 = vpack.c.bf16 %v1155_v25, %v1154_v24 }
 0x1ce   : > { %1779 = vmatpush1.bf16.msra.mxu0 %v1778_v32  ;;  %v853_v32 = vld [vmem:[#allocation6 + $0x3c8] sm:$0xff] }
 0x1cf   : > { %1781 = vmatprep.subr.bf16.mxu0 %v1780_v33  ;;  %v855_v33 = vld [vmem:[#allocation6 + $0x3d8] sm:$0xff] }
 0x1d0   : > { %v1816_v36 = vpack.c.bf16 %v855_v33, %v853_v32  ;;  %v1159_v32 = vld [vmem:[#allocation9 + $0x68] sm:$0xff] }
 0x1d1   : > { %v1880_v33 = vpack.c.bf16 %v1159_v32, %v1158_v31 }
 0x1d2   : > { %1783 = vmatpush1.bf16.msra.mxu0 %v1782_v38  ;;  %v854_v38 = vld [vmem:[#allocation6 + $0x3d0] sm:$0xff] }
 0x1d3   : > { %1785 = vmatprep.subr.bf16.mxu0 %v1784_v39  ;;  %v857_v39 = vld [vmem:[#allocation6 + $0x3e8] sm:$0xff]  ;;  %v1818_v41 = vpack.c.bf16 %v854_v38, %v852_v37  ;;  %v1246_v37 = vld [vmem:[#allocation10] sm:$0xff] }
 0x1d4   : > { %v1820_v43 = vpack.c.bf16 %v859_v40, %v857_v39  ;;  %v1247_v38 = vld [vmem:[#allocation10 + $0x8] sm:$0xff] }
 0x1d5   : > { %v1888_v39 = vpack.c.bf16 %v1247_v38, %v1246_v37 }
 0x1d6   : > { %1787 = vmatpush1.bf16.msra.mxu0 %v1786_v45  ;;  %v2601_v57 = vpop.f32.mrb[4].mxu1  ;;  %v858_v45 = vld [vmem:[#allocation6 + $0x3f0] sm:$0xff] }
 0x1d7   : > { %1789 = vmatprep.subr.bf16.mxu0 %v1788_v46  ;;  %v715_v60 = vpop.f32.mrb[5].mxu1  ;;  %v1822_v47 = vpack.c.bf16 %v858_v45, %v856_v44  ;;  %v714_v48 = vadd.f32 %v2601_v57, %v561_v42 }
 0x1d8   : > { %v716_v0 = vadd.f32 %v715_v60, %v2599_v55  ;;  %v1060_v60 = vld [vmem:[#allocation7 + $0xf0] sm:$0xff] }
 0x1d9   : > { %v726_v54 = vmax.f32 %v714_v48, 0.0 }
 0x1da   : > { %1791 = vmatpush1.bf16.msra.mxu0 %v1790_v56  ;;  %v727_v1 = vmax.f32 %v716_v0, 0.0  ;;  %v2604_v2 = vpop.f32.mrb[6].mxu1  ;;  %v1045_v0 = vld [vmem:[#allocation7 + $0x78] sm:$0xff] }
 0x1db   : > { %1793 = vmatprep.subr.bf16.mxu0 %v1792_v58  ;;  %v721_v5 = vpop.f32.mrb[7].mxu1  ;;  %v720_v56 = vadd.f32 %v2604_v2, %v561_v42  ;;  %v1854_v57 = vpack.c.bf16 %v1045_v0, %v1044_v62  ;;  %v860_v2 = vld [vmem:[%s2649_s4] sm:$0x3] }
 0x1dc   : > { %1013 = vmatprep.mubr.f32.mxu0 %v727_v1  ;;  %v722_v46 = vadd.f32 %v721_v5, %v2599_v55  ;;  %v1852_v55 = vpack.c.bf16 %v1061_v61, %v1060_v60  ;;  %v1147_v1 = vld [vmem:[#allocation9 + $0x8] sm:$0xff]  ;;  %v865_v3 = vrot.slane %v860_v2, %v552_v51  ;;  %v869_v4 = vrot.slane %v860_v2, %v556_v53  ;;  %v1252_v61 = vld [vmem:[#allocation10 + $0x30] sm:$0xff]  ;;  %v1254_v0 = vld [vmem:[#allocation10 + $0x40] sm:$0xff] }
 0x1dd   : > { %v730_v58 = vmax.f32 %v720_v56, 0.0  ;;  %v1864_v53 = vpack.c.bf16 %v1151_v20, %v1150_v19  ;;  %v1896_v60 = vpack.c.bf16 %v1251_v16, %v1250_v59 }
 0x1de   : > { %1795 = vmatpush1.bf16.msra.mxu0 %v1794_v63  ;;  %v731_v49 = vmax.f32 %v722_v46, 0.0  ;;  %1853 = vmatprep.subr.bf16.mxu1 %v1852_v55  ;;  %v1146_v63 = vld [vmem:[#allocation9] sm:$0xff]  ;;  %v1253_v55 = vld [vmem:[#allocation10 + $0x38] sm:$0xff] }
 0x1df   : > { %1797 = vmatprep.subr.bf16.mxu0 %v1796_v30  ;;  %1855 = vmatpush3.bf16.msra.mxu1 %v1854_v57  ;;  %v1856_v30 = vpack.c.bf16 %v1147_v1, %v1146_v63  ;;  %v1900_v62 = vpack.c.bf16 %v1253_v55, %v1252_v61  ;;  %v1255_v57 = vld [vmem:[#allocation10 + $0x48] sm:$0xff]  ;;  %v1256_v1 = vld [vmem:[#allocation10 + $0x50] sm:$0xff] }
 0x1e0   : > { %v1904_v63 = vpack.c.bf16 %v1255_v57, %v1254_v0 }
 0x1e1   : > { %1857 = vmatprep.subr.bf16.mxu1 %v1856_v30 }
 0x1e2   : > { %1799 = vmatpush1.bf16.msra.mxu0 %v1798_v8 }
 0x1e3   : > { %1801 = vmatprep.subr.bf16.mxu0 %v1800_v9  ;;  %v1148_v9 = vld [vmem:[#allocation9 + $0x10] sm:$0xff] }
 0x1e4   : > { %v1860_v17 = vpack.c.bf16 %v1149_v10, %v1148_v9  ;;  %v1483_v9 = vld [vmem:[%s2683_s12] ss:$0 sm:$0xff] }
 0x1e6   : > { %1803 = vmatpush1.bf16.msra.mxu0 %v1802_v14 }
 0x1e7   : > { %1805 = vmatprep.subr.bf16.mxu0 %v1804_v15 }
 0x1ea   : > { %1807 = vmatpush1.bf16.msra.mxu0 %v1806_v21  ;;  %v1152_v21 = vld [vmem:[#allocation9 + $0x30] sm:$0xff] }
 0x1eb   : > { %1809 = vmatprep.subr.bf16.mxu0 %v1808_v22  ;;  %v1153_v22 = vld [vmem:[#allocation9 + $0x38] sm:$0xff] }
 0x1ec   : > { %v1868_v23 = vpack.c.bf16 %v1153_v22, %v1152_v21 }
 0x1ee   : > { %1811 = vmatpush1.bf16.msra.mxu0 %v1810_v27  ;;  %v1156_v27 = vld [vmem:[#allocation9 + $0x50] sm:$0xff] }
 0x1ef   : > { %1813 = vmatprep.subr.bf16.mxu0 %v1812_v28  ;;  %v1157_v28 = vld [vmem:[#allocation9 + $0x58] sm:$0xff] }
 0x1f0   : > { %v1876_v29 = vpack.c.bf16 %v1157_v28, %v1156_v27 }
 0x1f2   : > { %1815 = vmatpush1.bf16.msra.mxu0 %v1814_v34  ;;  %v1160_v34 = vld [vmem:[#allocation9 + $0x70] sm:$0xff] }
 0x1f3   : > { %1817 = vmatprep.subr.bf16.mxu0 %v1816_v36  ;;  %v1884_v36 = vpack.c.bf16 %v1161_v35, %v1160_v34 }
 0x1f6   : > { %1819 = vmatpush1.bf16.msra.mxu0 %v1818_v41  ;;  %v1482_v41 = vld [vmem:[%s2651_s6] ss:$0 sm:$0xff] }
 0x1f7   : > { %1821 = vmatprep.subr.bf16.mxu0 %v1820_v43 }
 0x1fa   : > { %1823 = vmatpush1.bf16.msra.mxu0 %v1822_v47 }
 0x1fd   : > { %1014 = vmatmul.mubr.f32.vlgmr.msra.gmra.mrb[0].mxu0 %v726_v54  ;;  %v1249_v54 = vld [vmem:[#allocation10 + $0x18] sm:$0xff] }
 0x1fe   : > { %1019 = vmatprep.mubr.f32.mxu0 %v731_v49  ;;  %v1248_v49 = vld [vmem:[#allocation10 + $0x10] sm:$0xff] }
 0x1ff   : > { %v1892_v52 = vpack.c.bf16 %v1249_v54, %v1248_v49 }
 0x201   : > { %1020 = vmatmul.mubr.f32.gmra.mrb[2].mxu0 %v730_v58 }
 0x2d0   : > { %v1015_v5 = vpop.f32.mrb[0].mxu0 }
 0x2d1   : > { %v1920_v6 = vadd.f32 %v1015_v5, %v865_v3  ;;  %v1017_v7 = vpop.f32.mrb[1].mxu0 }
 0x2d2   : > { %v1921_v8 = vadd.f32 %v1017_v7, %v869_v4  ;;  %v1261_v7 = vld [vmem:[#allocation10 + $0x78] sm:$0xff] }
 0x2d3   : > { %v1026_v13 = vmax.f32 %v1920_v6, 0.0  ;;  %v1260_v6 = vld [vmem:[#allocation10 + $0x70] sm:$0xff] }
 0x2d4   : > { %v1027_v11 = vmax.f32 %v1921_v8, 0.0  ;;  %v1021_v12 = vpop.f32.mrb[2].mxu0  ;;  %v1916_v8 = vpack.c.bf16 %v1261_v7, %v1260_v6 }
 0x2d5   : > { %v1922_v14 = vadd.f32 %v1021_v12, %v865_v3  ;;  %v1023_v15 = vpop.f32.mrb[3].mxu0  ;;  %v1258_v3 = vld [vmem:[#allocation10 + $0x60] sm:$0xff] }
 0x2d6   : > { %v1923_v18 = vadd.f32 %v1023_v15, %v869_v4  ;;  %1133 = vmatprep.mubr.f32.mxu1 %v1027_v11  ;;  %v1259_v4 = vld [vmem:[#allocation10 + $0x68] sm:$0xff] }
 0x2d7   : > { %1134 = vmatmul.mubr.f32.vlgmr.msra.gmra.mrb[8].mxu1 %v1026_v13  ;;  %v1028_v50 = vmax.f32 %v1922_v14, 0.0  ;;  %v1912_v5 = vpack.c.bf16 %v1259_v4, %v1258_v3 }
 0x2d8   : > { %v1029_v51 = vmax.f32 %v1923_v18, 0.0  ;;  %1859 = vmatpush3.bf16.msra.mxu1 %v1856_v30  ;;  %v1257_v30 = vld [vmem:[#allocation10 + $0x58] sm:$0xff] }
 0x2d9   : > { %1861 = vmatprep.subr.bf16.mxu1 %v1860_v17  ;;  %v1908_v2 = vpack.c.bf16 %v1257_v30, %v1256_v1 }
 0x2da   : > { %1138 = vmatprep.mubr.f32.mxu1 %v1029_v51 }
 0x2db   : > { %1139 = vmatmul.mubr.f32.gmra.mrb[10].mxu1 %v1028_v50 }
 0x2dc   : > { %1863 = vmatpush3.bf16.msra.mxu1 %v1860_v17  ;;  %v1484_v17 = vld [vmem:[%s2685_s17] ss:$0 sm:$0xff] }
 0x2dd   : > { %1865 = vmatprep.subr.bf16.mxu1 %v1864_v53 }
 0x2e0   : > { %1867 = vmatpush3.bf16.msra.mxu1 %v1864_v53 }
 0x2e1   : > { %1869 = vmatprep.subr.bf16.mxu1 %v1868_v23 }
 0x2e4   : > { %1871 = vmatpush3.bf16.msra.mxu1 %v1868_v23 }
 0x2e5   : > { %1873 = vmatprep.subr.bf16.mxu1 %v1872_v26 }
 0x2e8   : > { %1875 = vmatpush3.bf16.msra.mxu1 %v1872_v26 }
 0x2e9   : > { %1877 = vmatprep.subr.bf16.mxu1 %v1876_v29 }
 0x2ec   : > { %1879 = vmatpush3.bf16.msra.mxu1 %v1876_v29 }
 0x2ed   : > { %1881 = vmatprep.subr.bf16.mxu1 %v1880_v33 }
 0x2f0   : > { %1883 = vmatpush3.bf16.msra.mxu1 %v1880_v33 }
 0x2f1   : > { %1885 = vmatprep.subr.bf16.mxu1 %v1884_v36 }
 0x2f4   : > { %1887 = vmatpush3.bf16.msra.mxu1 %v1884_v36 }
 0x2f5   : > { %1889 = vmatprep.subr.bf16.mxu1 %v1888_v39 }
 0x3aa   : > { %v1520_v40 = vpop.f32.mrb[8].mxu1 }
 0x3ab   : > { %v1521_v42 = vpop.f32.mrb[9].mxu1 }
 0x3ac   : > { %v1522_v43 = vadd.f32 %v1521_v42, %v1520_v40 }
 0x3ae   : > { %v1136_v44 = vadd.f32 %v1522_v43, %v1482_v41  ;;  %v1523_v45 = vpop.f32.mrb[10].mxu1 }
 0x3af   : > { %v1524_v46 = vpop.f32.mrb[11].mxu1 }
 0x3b0   : > { %v1144_v47 = vmax.f32 %v1136_v44, 0.0  ;;  %v1525_v48 = vadd.f32 %v1524_v46, %v1523_v45 }
 0x3b2   : > { %v1141_v56 = vadd.f32 %v1525_v48, %v1482_v41  ;;  %1594 = vmatprep.mubr.f32.mxu1 %v1144_v47 }
 0x3b4   : > { %v1145_v58 = vmax.f32 %v1141_v56, 0.0 }
 0x3b6   : > { %1595 = vmatmul.mubr.f32.vlgmr.msra.gmra.mrb[12].mxu1 %v1145_v58 }
 0x3b7   : > { %1891 = vmatpush3.bf16.msra.mxu1 %v1888_v39 }
 0x3b8   : > { %1893 = vmatprep.subr.bf16.mxu1 %v1892_v52 }
 0x3bb   : > { %1895 = vmatpush3.bf16.msra.mxu1 %v1892_v52 }
 0x3bc   : > { %1897 = vmatprep.subr.bf16.mxu1 %v1896_v60 }
 0x3bf   : > { %1899 = vmatpush3.bf16.msra.mxu1 %v1896_v60 }
 0x3c0   : > { %1901 = vmatprep.subr.bf16.mxu1 %v1900_v62 }
 0x3c3   : > { %1903 = vmatpush3.bf16.msra.mxu1 %v1900_v62 }
 0x3c4   : > { %1905 = vmatprep.subr.bf16.mxu1 %v1904_v63 }
 0x3c7   : > { %1907 = vmatpush3.bf16.msra.mxu1 %v1904_v63 }
 0x3c8   : > { %1909 = vmatprep.subr.bf16.mxu1 %v1908_v2 }
 0x3cb   : > { %1911 = vmatpush3.bf16.msra.mxu1 %v1908_v2 }
 0x3cc   : > { %1913 = vmatprep.subr.bf16.mxu1 %v1912_v5 }
 0x3cf   : > { %1915 = vmatpush3.bf16.msra.mxu1 %v1912_v5 }
 0x3d0   : > { %1917 = vmatprep.subr.bf16.mxu1 %v1916_v8 }
 0x3d3   : > { %1919 = vmatpush3.bf16.msra.mxu1 %v1916_v8 }
 0x489   : > { %v1596_v10 = vpop.f32.mrb[12].mxu1 }
 0x48a   : > { %v1241_v11 = vadd.f32 %v1596_v10, %v1483_v9  ;;  %v1235_v12 = vpop.f32.mrb[13].mxu1 }
 0x48b   : > { %v1236_v13 = vadd.f32 %v1483_v9, %v1235_v12 }
 0x48c   : > { %v1245_v15 = vmax.f32 %v1241_v11, 0.0 }
 0x48d   : > { %v1244_v14 = vmax.f32 %v1236_v13, 0.0 }
 0x48f   : > { %1629 = vmatprep.mubr.f32.mxu1 %v1244_v14 }
 0x490   : > { %1630 = vmatmul.mubr.f32.vlgmr.msra.gmra.mrb[14].mxu1 %v1245_v15 }
 0x563   : > { %v1631_v18 = vpop.f32.mrb[14].mxu1 }
 0x564   : > { %v1335_v19 = vpop.f32.mrb[15].mxu1  ;;  %v1341_v51 = vadd.f32 %v1631_v18, %v1484_v17 }
 0x565   : > { %v1336_v20 = vadd.f32 %v1484_v17, %v1335_v19 }
 0x566   : > { %1345 = vst [vmem:[%s480_s30 + $0x8] sm:$0xff] %v1341_v51 }
 0x567   : > { %1344 = vst [vmem:[%s480_s30] sm:$0xff] %v1336_v20 }
 0x568 PF: > { %p24_p5 = scmp.ge.s32.totalorder %s2480_s28, 4   ;;  %s2687_s17 = smov %s2233_s18 }
 0x569   : > { %s2688_s18 = smov %s2237_s19  ;;  %s2689_s19 = smov %s2491_s1 }
 0x56a   : > { %s2690_s20 = smov %s2480_s28  ;;  %26 = sbr.rel (!%p24_p5) target bundleno = 12 (0xc), region = 124 }
 0x571   :  { %1368 = vsyncpa [#allocation3], 1 }
 0x572   :  { %1370 = vsyncpa [#allocation3 + $0x1], 1 }
 0x573   :  { %1371 = vsyncpa [#allocation5], 1 }
 0x574   :  { %1372 = vsyncpa [#allocation8], 1 }
 0x575   :  { %1373 = vsyncpa [#allocation11], 1 }

</bundles_post_ra>
